<compile_context>
chip_gen: v7x
topology: tpu7x:2x2x1
jax: 0.10.0
libtpu: 0.0.40
codegen_flags: <defaults>
</compile_context>

<pallas_src>
import functools

import jax
import jax.numpy as jnp
from jax.experimental import pallas as pl
from jax.experimental.pallas import tpu as pltpu


def _round_up(n, m):
    return ((n + m - 1) // m) * m


def _pad2d(x, rows, cols):
    return jnp.pad(x, ((0, rows - x.shape[0]), (0, cols - x.shape[1])))


def _make_sage_kernel(tm, training):
    """Two fused SAGEConv('mean') layers; layer-1 result cached in bf16 VMEM."""

    def kernel(a1_ref, invd1_ref, h_ref, w1s_ref, w1n_ref, b1_ref, *rest):
        if training:
            drop_ref = rest[0]
            rest = rest[1:]
        a2_ref, invd2_ref, w2s_ref, w2n_ref, b2_ref, o_ref, h1_ref = rest

        i = pl.program_id(0)

        # ---- layer 1: computed once at grid step 0, cached in bf16 scratch ----
        @pl.when(i == 0)
        def _():
            h_src = h_ref[...]                                      # bf16
            # mean aggregation: binary-A matmul (f32 acc) then f32 1/deg scaling
            h_neigh = (jnp.dot(a1_ref[...], h_src,
                               preferred_element_type=jnp.float32)
                       * invd1_ref[...])                            # (n_dst1, d_in)
            h_dst = h_src[:h1_ref.shape[0]]        # dst nodes = first src rows
            # two accumulating dots instead of concat + merged weight
            out1 = (jnp.dot(h_dst, w1s_ref[...],
                            preferred_element_type=jnp.float32)
                    + jnp.dot(h_neigh.astype(jnp.bfloat16), w1n_ref[...],
                              preferred_element_type=jnp.float32)
                    + b1_ref[...])
            out1 = jnp.maximum(out1, 0.0)                           # ReLU
            if training:                                            # Dropout(0.5)
                out1 = out1 * drop_ref[...]        # mask holds {0, 2} in bf16
            h1_ref[...] = out1.astype(jnp.bfloat16)

        # ---- layer 2: one tm-row dst stripe per grid step ----
        h1 = h1_ref[...]                                            # bf16, no recast
        h_neigh2 = (jnp.dot(a2_ref[...], h1,
                            preferred_element_type=jnp.float32)
                    * invd2_ref[...]).astype(jnp.bfloat16)
        row0 = pl.multiple_of(i * tm, tm)          # aligned sublane load
        h_dst2 = h1_ref[pl.ds(row0, tm), :]        # dst = first src rows
        o_ref[...] = (jnp.dot(h_dst2, w2s_ref[...],
                              preferred_element_type=jnp.float32)
                      + jnp.dot(h_neigh2, w2n_ref[...],
                                preferred_element_type=jnp.float32)
                      + b2_ref[...]).astype(o_ref.dtype)

    return kernel


def sage_forward(blocks, x, params, dropout_key=None, *, training=True):
    """Fused 2-layer GraphSAGE ('mean') forward in one pallas_call.

    `blocks` are dense BINARY adjacencies (num_dst, num_src); the mean
    normalization is applied in f32 inside the kernel.
    """
    assert len(blocks) == 2 and len(params) == 2
    a1, a2 = blocks
    nd1, ns1 = a1.shape            # block 0: num_dst0 x num_src0
    nd2, ns2 = a2.shape            # block 1: num_dst1 x num_dst0
    assert ns2 == nd1, "block 1 src nodes must be block 0 dst nodes"

    in_size = x.shape[1]
    hid_size = params[0]["w_self"].shape[1]
    out_size = params[1]["w_self"].shape[1]

    # lane-dense (128) feature padding
    d_in = _round_up(in_size, 128)
    d_hid = _round_up(hid_size, 128)
    d_out = _round_up(out_size, 128)

    # layer-2 stripe size (256 feeds the v6e/v7x 256-wide MXU; keep 128 on v5e)
    if nd2 <= 128:
        tm = _round_up(nd2, 8)
    else:
        tm = 256 if nd2 >= 256 else 128
    n_dst2 = _round_up(nd2, tm)
    # padded h1 must cover every padded layer-2 dst row (dst nodes are a prefix
    # of src nodes) -> the dynamic h1 slice can never go out of bounds.
    n_dst1 = max(_round_up(nd1, 8), n_dst2)
    n_src1 = max(_round_up(ns1, 8), n_dst1)

    # binary adjacency is exact in bf16; zero padding keeps padded rows inert
    a1_p = _pad2d(a1, n_dst1, n_src1).astype(jnp.bfloat16)
    a2_p = _pad2d(a2, n_dst2, n_dst1).astype(jnp.bfloat16)
    invd1 = _pad2d(1.0 / jnp.maximum(a1.sum(axis=1, keepdims=True), 1.0),
                   n_dst1, 1).astype(jnp.float32)
    invd2 = _pad2d(1.0 / jnp.maximum(a2.sum(axis=1, keepdims=True), 1.0),
                   n_dst2, 1).astype(jnp.float32)
    h_p = _pad2d(x, n_src1, d_in).astype(jnp.bfloat16)

    w1s = _pad2d(params[0]["w_self"], d_in, d_hid).astype(jnp.bfloat16)
    w1n = _pad2d(params[0]["w_neigh"], d_in, d_hid).astype(jnp.bfloat16)
    w2s = _pad2d(params[1]["w_self"], d_hid, d_out).astype(jnp.bfloat16)
    w2n = _pad2d(params[1]["w_neigh"], d_hid, d_out).astype(jnp.bfloat16)
    b1 = _pad2d(params[0]["bias"], 1, d_hid).astype(jnp.float32)
    b2 = _pad2d(params[1]["bias"], 1, d_out).astype(jnp.float32)

    operands = [a1_p, invd1, h_p, w1s, w1n, b1]
    if training:
        # nn.Dropout(0.5): keep w.p. 0.5, scale kept values by 2. {0,2} is exact
        # in bf16 -> half the HBM/VMEM traffic of an f32 mask.
        keep = jax.random.bernoulli(dropout_key, 0.5, (n_dst1, d_hid))
        operands.append((keep * 2.0).astype(jnp.bfloat16))
    operands += [a2_p, invd2, w2s, w2n, b2]

    def build_specs(single_buffer):
        def res(shape):  # grid-invariant, VMEM-resident input
            if single_buffer:
                return pl.BlockSpec(shape, lambda i: (0, 0),
                                    pipeline_mode=pl.Buffered(buffer_count=1))
            return pl.BlockSpec(shape, lambda i: (0, 0))

        specs = [
            res((n_dst1, n_src1)),                       # A1
            res((n_dst1, 1)),                            # 1/deg layer 1
            res((n_src1, d_in)),                         # H
            res((d_in, d_hid)),                          # W1_self
            res((d_in, d_hid)),                          # W1_neigh
            res((1, d_hid)),                             # b1
        ]
        if training:
            specs.append(res((n_dst1, d_hid)))           # dropout scale (bf16)
        specs += [
            pl.BlockSpec((tm, n_dst1), lambda i: (i, 0)),  # A2 row stripe
            pl.BlockSpec((tm, 1), lambda i: (i, 0)),       # 1/deg layer-2 stripe
            res((d_hid, d_out)),                         # W2_self
            res((d_hid, d_out)),                         # W2_neigh
            res((1, d_out)),                             # b2
        ]
        return specs

    # explicit scoped-VMEM limit sized to the resident set (v5e default is only
    # 16 MiB); 2x margin absorbs lane padding of the (n,1) columns + pipelining.
    bytes_in = sum(int(op.size) * op.dtype.itemsize for op in operands)
    bytes_scratch = n_dst1 * d_hid * 2
    bytes_out = 2 * tm * d_out * 4
    vmem_limit = int(min(max(2 * (bytes_in + bytes_scratch + bytes_out)
                             + (4 << 20), 32 << 20), 64 << 20))

    kernel = _make_sage_kernel(tm, training)
    out_shape = jax.ShapeDtypeStruct((n_dst2, d_out), jnp.float32)

    def run(single_buffer):
        return pl.pallas_call(
            kernel,
            out_shape=out_shape,
            grid=(n_dst2 // tm,),
            in_specs=build_specs(single_buffer),
            out_specs=pl.BlockSpec((tm, d_out), lambda i: (i, 0)),
            scratch_shapes=[pltpu.VMEM((n_dst1, d_hid), jnp.bfloat16)],  # h1 cache
            compiler_params=pltpu.CompilerParams(
                # all stripes reuse the h1 scratch written at step 0 -> sequential
                dimension_semantics=("arbitrary",),
                vmem_limit_bytes=vmem_limit),
        )(*operands)

    try:
        out_p = jax.block_until_ready(run(single_buffer=True))
    except Exception:
        # pipeline_mode=pl.Buffered not supported on this jax version; the
        # default double-buffered specs are semantically identical.
        out_p = jax.block_until_ready(run(single_buffer=False))

    # strip node-count and lane padding
    return out_p[:nd2, :out_size]


def _init_params(key, in_size, hid_size, out_size):
    """Deterministic init of the two SAGEConv layers' parameters."""
    dims = [(in_size, hid_size), (hid_size, out_size)]
    params = []
    for (din, dout) in dims:
        key, k1, k2 = jax.random.split(key, 3)
        scale = 1.0 / jnp.sqrt(jnp.float32(din))
        params.append({
            "w_self": jax.random.uniform(k1, (din, dout), jnp.float32,
                                         -scale, scale),
            "w_neigh": jax.random.uniform(k2, (din, dout), jnp.float32,
                                          -scale, scale),
            "bias": jnp.zeros((1, dout), jnp.float32),
        })
    return params


def _make_block(key, num_dst, num_src):
    """Dense random BINARY bipartite block (row i = neighbors of dst node i)."""
    return (jax.random.uniform(key, (num_dst, num_src)) < 0.3).astype(jnp.float32)


if __name__ == "__main__":
    in_size, hid_size, out_size = 16, 32, 8
    num_src0, num_dst0 = 64, 32       # block 0: 64 src -> 32 dst
    num_dst1 = 16                     # block 1: 32 src -> 16 dst

    root = jax.random.PRNGKey(0)
    k_feat, k_b0, k_b1, k_param, k_drop = jax.random.split(root, 5)

    x = jax.random.normal(k_feat, (num_src0, in_size), jnp.float32)
    blocks = [_make_block(k_b0, num_dst0, num_src0),
              _make_block(k_b1, num_dst1, num_dst0)]
    params = _init_params(k_param, in_size, hid_size, out_size)

    out = sage_forward(blocks, x, params, dropout_key=k_drop, training=True)
    out = jax.block_until_ready(out)
    assert out.shape == (num_dst1, out_size)

    # eval-mode variant compiles without the dropout mask operand entirely
    out_eval = jax.block_until_ready(
        sage_forward(blocks, x, params, training=False))
    assert out_eval.shape == (num_dst1, out_size)

    print("KERNEL_OK")
</pallas_src>

<mosaic_0001>
module attributes {stable_mosaic.version = 11 : i64} {
  func.func @kernel(%arg0: i32, %arg1: memref<32x64xbf16, #tpu.memory_space<vmem>>, %arg2: memref<32x1xf32, #tpu.memory_space<vmem>>, %arg3: memref<64x128xbf16, #tpu.memory_space<vmem>>, %arg4: memref<128x128xbf16, #tpu.memory_space<vmem>>, %arg5: memref<128x128xbf16, #tpu.memory_space<vmem>>, %arg6: memref<1x128xf32, #tpu.memory_space<vmem>>, %arg7: memref<32x128xbf16, #tpu.memory_space<vmem>>, %arg8: memref<16x32xbf16, #tpu.memory_space<vmem>>, %arg9: memref<16x1xf32, #tpu.memory_space<vmem>>, %arg10: memref<128x128xbf16, #tpu.memory_space<vmem>>, %arg11: memref<128x128xbf16, #tpu.memory_space<vmem>>, %arg12: memref<1x128xf32, #tpu.memory_space<vmem>>, %arg13: memref<16x128xf32, #tpu.memory_space<vmem>>, %arg14: memref<32x128xbf16, #tpu.memory_space<vmem>>) attributes {dimension_semantics = [#tpu.dimension_semantics<arbitrary>], iteration_bounds = array<i64: 1>, scalar_prefetch = 0 : i64, scratch_operands = 1 : i64, tpu.core_type = #tpu.core_type<tc>, window_params = [{pipeline_mode = #tpu.pipeline_mode<synchronous>, transform_indices = @transform_0, window_bounds = array<i64: 32, 64>}, {pipeline_mode = #tpu.pipeline_mode<synchronous>, transform_indices = @transform_1, window_bounds = array<i64: 32, 1>}, {pipeline_mode = #tpu.pipeline_mode<synchronous>, transform_indices = @transform_2, window_bounds = array<i64: 64, 128>}, {pipeline_mode = #tpu.pipeline_mode<synchronous>, transform_indices = @transform_3, window_bounds = array<i64: 128, 128>}, {pipeline_mode = #tpu.pipeline_mode<synchronous>, transform_indices = @transform_4, window_bounds = array<i64: 128, 128>}, {pipeline_mode = #tpu.pipeline_mode<synchronous>, transform_indices = @transform_5, window_bounds = array<i64: 1, 128>}, {pipeline_mode = #tpu.pipeline_mode<synchronous>, transform_indices = @transform_6, window_bounds = array<i64: 32, 128>}, {transform_indices = @transform_7, window_bounds = array<i64: 16, 32>}, {transform_indices = @transform_8, window_bounds = array<i64: 16, 1>}, {pipeline_mode = #tpu.pipeline_mode<synchronous>, transform_indices = @transform_9, window_bounds = array<i64: 128, 128>}, {pipeline_mode = #tpu.pipeline_mode<synchronous>, transform_indices = @transform_10, window_bounds = array<i64: 128, 128>}, {pipeline_mode = #tpu.pipeline_mode<synchronous>, transform_indices = @transform_11, window_bounds = array<i64: 1, 128>}, {transform_indices = @transform_12, window_bounds = array<i64: 16, 128>}]} {
    %c0_i32 = arith.constant 0 : i32
    %0 = arith.cmpi eq, %arg0, %c0_i32 : i32
    %1 = arith.extui %0 : i1 to i32
    %c0_i32_0 = arith.constant 0 : i32
    %2 = arith.cmpi ne, %1, %c0_i32_0 : i32
    scf.if %2 {
      %c0_17 = arith.constant 0 : index
      %c0_18 = arith.constant 0 : index
      %23 = vector.load %arg3[%c0_17, %c0_18] : memref<64x128xbf16, #tpu.memory_space<vmem>>, vector<64x128xbf16>
      %c0_19 = arith.constant 0 : index
      %c0_20 = arith.constant 0 : index
      %24 = vector.load %arg1[%c0_19, %c0_20] : memref<32x64xbf16, #tpu.memory_space<vmem>>, vector<32x64xbf16>
      %cst_21 = arith.constant dense<0.000000e+00> : vector<32x128xf32>
      %25 = tpu.matmul %24, %23, %cst_21 {dimension_numbers = #tpu.dot_dimension_numbers<[1], [0], [0], [1], [0, 0, 1, 1], [], []>} : vector<32x64xbf16>, vector<64x128xbf16>, vector<32x128xf32> -> vector<32x128xf32>
      %c0_22 = arith.constant 0 : index
      %c0_23 = arith.constant 0 : index
      %26 = vector.load %arg2[%c0_22, %c0_23] : memref<32x1xf32, #tpu.memory_space<vmem>>, vector<32x1xf32>
      %27 = vector.broadcast %26 : vector<32x1xf32> to vector<32x128xf32>
      %28 = arith.mulf %25, %27 : vector<32x128xf32>
      %29 = vector.extract_strided_slice %23 {offsets = [0, 0], sizes = [32, 128], strides = [1, 1]} : vector<64x128xbf16> to vector<32x128xbf16>
      %c0_24 = arith.constant 0 : index
      %c0_25 = arith.constant 0 : index
      %30 = vector.load %arg4[%c0_24, %c0_25] : memref<128x128xbf16, #tpu.memory_space<vmem>>, vector<128x128xbf16>
      %cst_26 = arith.constant dense<0.000000e+00> : vector<32x128xf32>
      %31 = tpu.matmul %29, %30, %cst_26 {dimension_numbers = #tpu.dot_dimension_numbers<[1], [0], [0], [1], [0, 0, 1, 1], [], []>} : vector<32x128xbf16>, vector<128x128xbf16>, vector<32x128xf32> -> vector<32x128xf32>
      %32 = arith.truncf %28 : vector<32x128xf32> to vector<32x128xbf16>
      %c0_27 = arith.constant 0 : index
      %c0_28 = arith.constant 0 : index
      %33 = vector.load %arg5[%c0_27, %c0_28] : memref<128x128xbf16, #tpu.memory_space<vmem>>, vector<128x128xbf16>
      %cst_29 = arith.constant dense<0.000000e+00> : vector<32x128xf32>
      %34 = tpu.matmul %32, %33, %cst_29 {dimension_numbers = #tpu.dot_dimension_numbers<[1], [0], [0], [1], [0, 0, 1, 1], [], []>} : vector<32x128xbf16>, vector<128x128xbf16>, vector<32x128xf32> -> vector<32x128xf32>
      %35 = arith.addf %31, %34 : vector<32x128xf32>
      %c0_30 = arith.constant 0 : index
      %c0_31 = arith.constant 0 : index
      %36 = vector.load %arg6[%c0_30, %c0_31] : memref<1x128xf32, #tpu.memory_space<vmem>>, vector<1x128xf32>
      %37 = vector.broadcast %36 : vector<1x128xf32> to vector<32x128xf32>
      %38 = arith.addf %35, %37 : vector<32x128xf32>
      %cst_32 = arith.constant 0.000000e+00 : f32
      %39 = vector.broadcast %cst_32 : f32 to vector<32x128xf32>
      %40 = arith.maximumf %38, %39 : vector<32x128xf32>
      %c0_33 = arith.constant 0 : index
      %c0_34 = arith.constant 0 : index
      %41 = vector.load %arg7[%c0_33, %c0_34] : memref<32x128xbf16, #tpu.memory_space<vmem>>, vector<32x128xbf16>
      %42 = arith.extf %41 : vector<32x128xbf16> to vector<32x128xf32>
      %43 = arith.mulf %40, %42 : vector<32x128xf32>
      %44 = arith.truncf %43 : vector<32x128xf32> to vector<32x128xbf16>
      %c0_35 = arith.constant 0 : index
      %c0_36 = arith.constant 0 : index
      %45 = vector.load %arg14[%c0_35, %c0_36] : memref<32x128xbf16, #tpu.memory_space<vmem>>, vector<32x128xbf16>
      tpu.vector_store %arg14[%c0_35, %c0_36], %44 {strides = array<i32>} : memref<32x128xbf16, #tpu.memory_space<vmem>>, vector<32x128xbf16>,
    } else {
    }
    %c0 = arith.constant 0 : index
    %c0_1 = arith.constant 0 : index
    %3 = vector.load %arg14[%c0, %c0_1] : memref<32x128xbf16, #tpu.memory_space<vmem>>, vector<32x128xbf16>
    %c0_2 = arith.constant 0 : index
    %c0_3 = arith.constant 0 : index
    %4 = vector.load %arg8[%c0_2, %c0_3] : memref<16x32xbf16, #tpu.memory_space<vmem>>, vector<16x32xbf16>
    %cst = arith.constant dense<0.000000e+00> : vector<16x128xf32>
    %5 = tpu.matmul %4, %3, %cst {dimension_numbers = #tpu.dot_dimension_numbers<[1], [0], [0], [1], [0, 0, 1, 1], [], []>} : vector<16x32xbf16>, vector<32x128xbf16>, vector<16x128xf32> -> vector<16x128xf32>
    %c0_4 = arith.constant 0 : index
    %c0_5 = arith.constant 0 : index
    %6 = vector.load %arg9[%c0_4, %c0_5] : memref<16x1xf32, #tpu.memory_space<vmem>>, vector<16x1xf32>
    %7 = vector.broadcast %6 : vector<16x1xf32> to vector<16x128xf32>
    %8 = arith.mulf %5, %7 : vector<16x128xf32>
    %9 = arith.truncf %8 : vector<16x128xf32> to vector<16x128xbf16>
    %c16_i32 = arith.constant 16 : i32
    %10 = arith.muli %arg0, %c16_i32 : i32
    %11 = tpu.assume_multiple %10, 16 : i32
    %12 = arith.index_cast %11 : i32 to index
    %c0_6 = arith.constant 0 : index
    %13 = vector.load %arg14[%12, %c0_6] : memref<32x128xbf16, #tpu.memory_space<vmem>>, vector<16x128xbf16>
    %c0_7 = arith.constant 0 : index
    %c0_8 = arith.constant 0 : index
    %14 = vector.load %arg10[%c0_7, %c0_8] : memref<128x128xbf16, #tpu.memory_space<vmem>>, vector<128x128xbf16>
    %cst_9 = arith.constant dense<0.000000e+00> : vector<16x128xf32>
    %15 = tpu.matmul %13, %14, %cst_9 {dimension_numbers = #tpu.dot_dimension_numbers<[1], [0], [0], [1], [0, 0, 1, 1], [], []>} : vector<16x128xbf16>, vector<128x128xbf16>, vector<16x128xf32> -> vector<16x128xf32>
    %c0_10 = arith.constant 0 : index
    %c0_11 = arith.constant 0 : index
    %16 = vector.load %arg11[%c0_10, %c0_11] : memref<128x128xbf16, #tpu.memory_space<vmem>>, vector<128x128xbf16>
    %cst_12 = arith.constant dense<0.000000e+00> : vector<16x128xf32>
    %17 = tpu.matmul %9, %16, %cst_12 {dimension_numbers = #tpu.dot_dimension_numbers<[1], [0], [0], [1], [0, 0, 1, 1], [], []>} : vector<16x128xbf16>, vector<128x128xbf16>, vector<16x128xf32> -> vector<16x128xf32>
    %18 = arith.addf %15, %17 : vector<16x128xf32>
    %c0_13 = arith.constant 0 : index
    %c0_14 = arith.constant 0 : index
    %19 = vector.load %arg12[%c0_13, %c0_14] : memref<1x128xf32, #tpu.memory_space<vmem>>, vector<1x128xf32>
    %20 = vector.broadcast %19 : vector<1x128xf32> to vector<16x128xf32>
    %21 = arith.addf %18, %20 : vector<16x128xf32>
    %c0_15 = arith.constant 0 : index
    %c0_16 = arith.constant 0 : index
    %22 = vector.load %arg13[%c0_15, %c0_16] : memref<16x128xf32, #tpu.memory_space<vmem>>, vector<16x128xf32>
    tpu.vector_store %arg13[%c0_15, %c0_16], %21 {strides = array<i32>} : memref<16x128xf32, #tpu.memory_space<vmem>>, vector<16x128xf32>,
    return
  }
  func.func @transform_0(%arg0: i32) -> (i32, i32) {
    %c0_i32 = arith.constant 0 : i32
    %c0_i32_0 = arith.constant 0 : i32
    %c0_i32_1 = arith.constant 0 : i32
    return %c0_i32, %c0_i32_0 : i32, i32
  }
  func.func @transform_1(%arg0: i32) -> (i32, i32) {
    %c0_i32 = arith.constant 0 : i32
    %c0_i32_0 = arith.constant 0 : i32
    %c0_i32_1 = arith.constant 0 : i32
    return %c0_i32, %c0_i32_0 : i32, i32
  }
  func.func @transform_2(%arg0: i32) -> (i32, i32) {
    %c0_i32 = arith.constant 0 : i32
    %c0_i32_0 = arith.constant 0 : i32
    %c0_i32_1 = arith.constant 0 : i32
    return %c0_i32, %c0_i32_0 : i32, i32
  }
  func.func @transform_3(%arg0: i32) -> (i32, i32) {
    %c0_i32 = arith.constant 0 : i32
    %c0_i32_0 = arith.constant 0 : i32
    %c0_i32_1 = arith.constant 0 : i32
    return %c0_i32, %c0_i32_0 : i32, i32
  }
  func.func @transform_4(%arg0: i32) -> (i32, i32) {
    %c0_i32 = arith.constant 0 : i32
    %c0_i32_0 = arith.constant 0 : i32
    %c0_i32_1 = arith.constant 0 : i32
    return %c0_i32, %c0_i32_0 : i32, i32
  }
  func.func @transform_5(%arg0: i32) -> (i32, i32) {
    %c0_i32 = arith.constant 0 : i32
    %c0_i32_0 = arith.constant 0 : i32
    %c0_i32_1 = arith.constant 0 : i32
    return %c0_i32, %c0_i32_0 : i32, i32
  }
  func.func @transform_6(%arg0: i32) -> (i32, i32) {
    %c0_i32 = arith.constant 0 : i32
    %c0_i32_0 = arith.constant 0 : i32
    %c0_i32_1 = arith.constant 0 : i32
    return %c0_i32, %c0_i32_0 : i32, i32
  }
  func.func @transform_7(%arg0: i32) -> (i32, i32) {
    %c0_i32 = arith.constant 0 : i32
    %c0_i32_0 = arith.constant 0 : i32
    return %arg0, %c0_i32 : i32, i32
  }
  func.func @transform_8(%arg0: i32) -> (i32, i32) {
    %c0_i32 = arith.constant 0 : i32
    %c0_i32_0 = arith.constant 0 : i32
    return %arg0, %c0_i32 : i32, i32
  }
  func.func @transform_9(%arg0: i32) -> (i32, i32) {
    %c0_i32 = arith.constant 0 : i32
    %c0_i32_0 = arith.constant 0 : i32
    %c0_i32_1 = arith.constant 0 : i32
    return %c0_i32, %c0_i32_0 : i32, i32
  }
  func.func @transform_10(%arg0: i32) -> (i32, i32) {
    %c0_i32 = arith.constant 0 : i32
    %c0_i32_0 = arith.constant 0 : i32
    %c0_i32_1 = arith.constant 0 : i32
    return %c0_i32, %c0_i32_0 : i32, i32
  }
  func.func @transform_11(%arg0: i32) -> (i32, i32) {
    %c0_i32 = arith.constant 0 : i32
    %c0_i32_0 = arith.constant 0 : i32
    %c0_i32_1 = arith.constant 0 : i32
    return %c0_i32, %c0_i32_0 : i32, i32
  }
  func.func @transform_12(%arg0: i32) -> (i32, i32) {
    %c0_i32 = arith.constant 0 : i32
    %c0_i32_0 = arith.constant 0 : i32
    return %arg0, %c0_i32 : i32, i32
  }
}

module attributes {stable_mosaic.version = 11 : i64} {
  func.func @kernel(%arg0: i32, %arg1: memref<32x64xbf16, #tpu.memory_space<vmem>>, %arg2: memref<32x1xf32, #tpu.memory_space<vmem>>, %arg3: memref<64x128xbf16, #tpu.memory_space<vmem>>, %arg4: memref<128x128xbf16, #tpu.memory_space<vmem>>, %arg5: memref<128x128xbf16, #tpu.memory_space<vmem>>, %arg6: memref<1x128xf32, #tpu.memory_space<vmem>>, %arg7: memref<32x128xbf16, #tpu.memory_space<vmem>>, %arg8: memref<16x32xbf16, #tpu.memory_space<vmem>>, %arg9: memref<16x1xf32, #tpu.memory_space<vmem>>, %arg10: memref<128x128xbf16, #tpu.memory_space<vmem>>, %arg11: memref<128x128xbf16, #tpu.memory_space<vmem>>, %arg12: memref<1x128xf32, #tpu.memory_space<vmem>>, %arg13: memref<16x128xf32, #tpu.memory_space<vmem>>, %arg14: memref<32x128xbf16, #tpu.memory_space<vmem>>) attributes {dimension_semantics = [#tpu.dimension_semantics<arbitrary>], iteration_bounds = array<i64: 1>, scalar_prefetch = 0 : i64, scratch_operands = 1 : i64, tpu.core_type = #tpu.core_type<tc>, window_params = [{pipeline_mode = #tpu.pipeline_mode<synchronous>, transform_indices = @transform_0, window_bounds = array<i64: 32, 64>}, {pipeline_mode = #tpu.pipeline_mode<synchronous>, transform_indices = @transform_1, window_bounds = array<i64: 32, 1>}, {pipeline_mode = #tpu.pipeline_mode<synchronous>, transform_indices = @transform_2, window_bounds = array<i64: 64, 128>}, {pipeline_mode = #tpu.pipeline_mode<synchronous>, transform_indices = @transform_3, window_bounds = array<i64: 128, 128>}, {pipeline_mode = #tpu.pipeline_mode<synchronous>, transform_indices = @transform_4, window_bounds = array<i64: 128, 128>}, {pipeline_mode = #tpu.pipeline_mode<synchronous>, transform_indices = @transform_5, window_bounds = array<i64: 1, 128>}, {pipeline_mode = #tpu.pipeline_mode<synchronous>, transform_indices = @transform_6, window_bounds = array<i64: 32, 128>}, {transform_indices = @transform_7, window_bounds = array<i64: 16, 32>}, {transform_indices = @transform_8, window_bounds = array<i64: 16, 1>}, {pipeline_mode = #tpu.pipeline_mode<synchronous>, transform_indices = @transform_9, window_bounds = array<i64: 128, 128>}, {pipeline_mode = #tpu.pipeline_mode<synchronous>, transform_indices = @transform_10, window_bounds = array<i64: 128, 128>}, {pipeline_mode = #tpu.pipeline_mode<synchronous>, transform_indices = @transform_11, window_bounds = array<i64: 1, 128>}, {transform_indices = @transform_12, window_bounds = array<i64: 16, 128>}]} {
    %c0_i32 = arith.constant 0 : i32
    %0 = arith.cmpi eq, %arg0, %c0_i32 : i32
    %1 = arith.extui %0 : i1 to i32
    %c0_i32_0 = arith.constant 0 : i32
    %2 = arith.cmpi ne, %1, %c0_i32_0 : i32
    scf.if %2 {
      %c0_17 = arith.constant 0 : index
      %c0_18 = arith.constant 0 : index
      %23 = vector.load %arg3[%c0_17, %c0_18] : memref<64x128xbf16, #tpu.memory_space<vmem>>, vector<64x128xbf16>
      %c0_19 = arith.constant 0 : index
      %c0_20 = arith.constant 0 : index
      %24 = vector.load %arg1[%c0_19, %c0_20] : memref<32x64xbf16, #tpu.memory_space<vmem>>, vector<32x64xbf16>
      %cst_21 = arith.constant dense<0.000000e+00> : vector<32x128xf32>
      %25 = tpu.matmul %24, %23, %cst_21 {dimension_numbers = #tpu.dot_dimension_numbers<[1], [0], [0], [1], [0, 0, 1, 1], [], []>} : vector<32x64xbf16>, vector<64x128xbf16>, vector<32x128xf32> -> vector<32x128xf32>
      %c0_22 = arith.constant 0 : index
      %c0_23 = arith.constant 0 : index
      %26 = vector.load %arg2[%c0_22, %c0_23] : memref<32x1xf32, #tpu.memory_space<vmem>>, vector<32x1xf32>
      %27 = vector.broadcast %26 : vector<32x1xf32> to vector<32x128xf32>
      %28 = arith.mulf %25, %27 : vector<32x128xf32>
      %29 = vector.extract_strided_slice %23 {offsets = [0, 0], sizes = [32, 128], strides = [1, 1]} : vector<64x128xbf16> to vector<32x128xbf16>
      %c0_24 = arith.constant 0 : index
      %c0_25 = arith.constant 0 : index
      %30 = vector.load %arg4[%c0_24, %c0_25] : memref<128x128xbf16, #tpu.memory_space<vmem>>, vector<128x128xbf16>
      %cst_26 = arith.constant dense<0.000000e+00> : vector<32x128xf32>
      %31 = tpu.matmul %29, %30, %cst_26 {dimension_numbers = #tpu.dot_dimension_numbers<[1], [0], [0], [1], [0, 0, 1, 1], [], []>} : vector<32x128xbf16>, vector<128x128xbf16>, vector<32x128xf32> -> vector<32x128xf32>
      %32 = arith.truncf %28 : vector<32x128xf32> to vector<32x128xbf16>
      %c0_27 = arith.constant 0 : index
      %c0_28 = arith.constant 0 : index
      %33 = vector.load %arg5[%c0_27, %c0_28] : memref<128x128xbf16, #tpu.memory_space<vmem>>, vector<128x128xbf16>
      %cst_29 = arith.constant dense<0.000000e+00> : vector<32x128xf32>
      %34 = tpu.matmul %32, %33, %cst_29 {dimension_numbers = #tpu.dot_dimension_numbers<[1], [0], [0], [1], [0, 0, 1, 1], [], []>} : vector<32x128xbf16>, vector<128x128xbf16>, vector<32x128xf32> -> vector<32x128xf32>
      %35 = arith.addf %31, %34 : vector<32x128xf32>
      %c0_30 = arith.constant 0 : index
      %c0_31 = arith.constant 0 : index
      %36 = vector.load %arg6[%c0_30, %c0_31] : memref<1x128xf32, #tpu.memory_space<vmem>>, vector<1x128xf32>
      %37 = vector.broadcast %36 : vector<1x128xf32> to vector<32x128xf32>
      %38 = arith.addf %35, %37 : vector<32x128xf32>
      %cst_32 = arith.constant 0.000000e+00 : f32
      %39 = vector.broadcast %cst_32 : f32 to vector<32x128xf32>
      %40 = arith.maximumf %38, %39 : vector<32x128xf32>
      %c0_33 = arith.constant 0 : index
      %c0_34 = arith.constant 0 : index
      %41 = vector.load %arg7[%c0_33, %c0_34] : memref<32x128xbf16, #tpu.memory_space<vmem>>, vector<32x128xbf16>
      %42 = arith.extf %41 : vector<32x128xbf16> to vector<32x128xf32>
      %43 = arith.mulf %40, %42 : vector<32x128xf32>
      %44 = arith.truncf %43 : vector<32x128xf32> to vector<32x128xbf16>
      %c0_35 = arith.constant 0 : index
      %c0_36 = arith.constant 0 : index
      %45 = vector.load %arg14[%c0_35, %c0_36] : memref<32x128xbf16, #tpu.memory_space<vmem>>, vector<32x128xbf16>
      tpu.vector_store %arg14[%c0_35, %c0_36], %44 {strides = array<i32>} : memref<32x128xbf16, #tpu.memory_space<vmem>>, vector<32x128xbf16>,
    } else {
    }
    %c0 = arith.constant 0 : index
    %c0_1 = arith.constant 0 : index
    %3 = vector.load %arg14[%c0, %c0_1] : memref<32x128xbf16, #tpu.memory_space<vmem>>, vector<32x128xbf16>
    %c0_2 = arith.constant 0 : index
    %c0_3 = arith.constant 0 : index
    %4 = vector.load %arg8[%c0_2, %c0_3] : memref<16x32xbf16, #tpu.memory_space<vmem>>, vector<16x32xbf16>
    %cst = arith.constant dense<0.000000e+00> : vector<16x128xf32>
    %5 = tpu.matmul %4, %3, %cst {dimension_numbers = #tpu.dot_dimension_numbers<[1], [0], [0], [1], [0, 0, 1, 1], [], []>} : vector<16x32xbf16>, vector<32x128xbf16>, vector<16x128xf32> -> vector<16x128xf32>
    %c0_4 = arith.constant 0 : index
    %c0_5 = arith.constant 0 : index
    %6 = vector.load %arg9[%c0_4, %c0_5] : memref<16x1xf32, #tpu.memory_space<vmem>>, vector<16x1xf32>
    %7 = vector.broadcast %6 : vector<16x1xf32> to vector<16x128xf32>
    %8 = arith.mulf %5, %7 : vector<16x128xf32>
    %9 = arith.truncf %8 : vector<16x128xf32> to vector<16x128xbf16>
    %c16_i32 = arith.constant 16 : i32
    %10 = arith.muli %arg0, %c16_i32 : i32
    %11 = tpu.assume_multiple %10, 16 : i32
    %12 = arith.index_cast %11 : i32 to index
    %c0_6 = arith.constant 0 : index
    %13 = vector.load %arg14[%12, %c0_6] : memref<32x128xbf16, #tpu.memory_space<vmem>>, vector<16x128xbf16>
    %c0_7 = arith.constant 0 : index
    %c0_8 = arith.constant 0 : index
    %14 = vector.load %arg10[%c0_7, %c0_8] : memref<128x128xbf16, #tpu.memory_space<vmem>>, vector<128x128xbf16>
    %cst_9 = arith.constant dense<0.000000e+00> : vector<16x128xf32>
    %15 = tpu.matmul %13, %14, %cst_9 {dimension_numbers = #tpu.dot_dimension_numbers<[1], [0], [0], [1], [0, 0, 1, 1], [], []>} : vector<16x128xbf16>, vector<128x128xbf16>, vector<16x128xf32> -> vector<16x128xf32>
    %c0_10 = arith.constant 0 : index
    %c0_11 = arith.constant 0 : index
    %16 = vector.load %arg11[%c0_10, %c0_11] : memref<128x128xbf16, #tpu.memory_space<vmem>>, vector<128x128xbf16>
    %cst_12 = arith.constant dense<0.000000e+00> : vector<16x128xf32>
    %17 = tpu.matmul %9, %16, %cst_12 {dimension_numbers = #tpu.dot_dimension_numbers<[1], [0], [0], [1], [0, 0, 1, 1], [], []>} : vector<16x128xbf16>, vector<128x128xbf16>, vector<16x128xf32> -> vector<16x128xf32>
    %18 = arith.addf %15, %17 : vector<16x128xf32>
    %c0_13 = arith.constant 0 : index
    %c0_14 = arith.constant 0 : index
    %19 = vector.load %arg12[%c0_13, %c0_14] : memref<1x128xf32, #tpu.memory_space<vmem>>, vector<1x128xf32>
    %20 = vector.broadcast %19 : vector<1x128xf32> to vector<16x128xf32>
    %21 = arith.addf %18, %20 : vector<16x128xf32>
    %c0_15 = arith.constant 0 : index
    %c0_16 = arith.constant 0 : index
    %22 = vector.load %arg13[%c0_15, %c0_16] : memref<16x128xf32, #tpu.memory_space<vmem>>, vector<16x128xf32>
    tpu.vector_store %arg13[%c0_15, %c0_16], %21 {strides = array<i32>} : memref<16x128xf32, #tpu.memory_space<vmem>>, vector<16x128xf32>,
    return
  }
  func.func @transform_0(%arg0: i32) -> (i32, i32) {
    %c0_i32 = arith.constant 0 : i32
    %c0_i32_0 = arith.constant 0 : i32
    %c0_i32_1 = arith.constant 0 : i32
    return %c0_i32, %c0_i32_0 : i32, i32
  }
  func.func @transform_1(%arg0: i32) -> (i32, i32) {
    %c0_i32 = arith.constant 0 : i32
    %c0_i32_0 = arith.constant 0 : i32
    %c0_i32_1 = arith.constant 0 : i32
    return %c0_i32, %c0_i32_0 : i32, i32
  }
  func.func @transform_2(%arg0: i32) -> (i32, i32) {
    %c0_i32 = arith.constant 0 : i32
    %c0_i32_0 = arith.constant 0 : i32
    %c0_i32_1 = arith.constant 0 : i32
    return %c0_i32, %c0_i32_0 : i32, i32
  }
  func.func @transform_3(%arg0: i32) -> (i32, i32) {
    %c0_i32 = arith.constant 0 : i32
    %c0_i32_0 = arith.constant 0 : i32
    %c0_i32_1 = arith.constant 0 : i32
    return %c0_i32, %c0_i32_0 : i32, i32
  }
  func.func @transform_4(%arg0: i32) -> (i32, i32) {
    %c0_i32 = arith.constant 0 : i32
    %c0_i32_0 = arith.constant 0 : i32
    %c0_i32_1 = arith.constant 0 : i32
    return %c0_i32, %c0_i32_0 : i32, i32
  }
  func.func @transform_5(%arg0: i32) -> (i32, i32) {
    %c0_i32 = arith.constant 0 : i32
    %c0_i32_0 = arith.constant 0 : i32
    %c0_i32_1 = arith.constant 0 : i32
    return %c0_i32, %c0_i32_0 : i32, i32
  }
  func.func @transform_6(%arg0: i32) -> (i32, i32) {
    %c0_i32 = arith.constant 0 : i32
    %c0_i32_0 = arith.constant 0 : i32
    %c0_i32_1 = arith.constant 0 : i32
    return %c0_i32, %c0_i32_0 : i32, i32
  }
  func.func @transform_7(%arg0: i32) -> (i32, i32) {
    %c0_i32 = arith.constant 0 : i32
    %c0_i32_0 = arith.constant 0 : i32
    return %arg0, %c0_i32 : i32, i32
  }
  func.func @transform_8(%arg0: i32) -> (i32, i32) {
    %c0_i32 = arith.constant 0 : i32
    %c0_i32_0 = arith.constant 0 : i32
    return %arg0, %c0_i32 : i32, i32
  }
  func.func @transform_9(%arg0: i32) -> (i32, i32) {
    %c0_i32 = arith.constant 0 : i32
    %c0_i32_0 = arith.constant 0 : i32
    %c0_i32_1 = arith.constant 0 : i32
    return %c0_i32, %c0_i32_0 : i32, i32
  }
  func.func @transform_10(%arg0: i32) -> (i32, i32) {
    %c0_i32 = arith.constant 0 : i32
    %c0_i32_0 = arith.constant 0 : i32
    %c0_i32_1 = arith.constant 0 : i32
    return %c0_i32, %c0_i32_0 : i32, i32
  }
  func.func @transform_11(%arg0: i32) -> (i32, i32) {
    %c0_i32 = arith.constant 0 : i32
    %c0_i32_0 = arith.constant 0 : i32
    %c0_i32_1 = arith.constant 0 : i32
    return %c0_i32, %c0_i32_0 : i32, i32
  }
  func.func @transform_12(%arg0: i32) -> (i32, i32) {
    %c0_i32 = arith.constant 0 : i32
    %c0_i32_0 = arith.constant 0 : i32
    return %arg0, %c0_i32 : i32, i32
  }
}

</mosaic_0001>

<bundles_post_ra>
// kernel: tpu_custom_call.1
= control target key start
LH: loop header
LB: loop body
LE: loop exit
PB: predicated region body
PF: predicated region fallthrough
CT: control target
= control target key end

     0   :  { %17 = vsyncpa [#allocation4], 0  ;;  %s1597_s0 = inlined_call_operand.hbm [shape: bf16[32,64], index: 0, kind: input, shape index: {}]   ;;  %s1598_s1 = inlined_call_operand.vmem [shape: f32[32,1], index: 1, kind: input, shape index: {}]   ;;  %s1599_s2 = inlined_call_operand.hbm [shape: bf16[64,128], index: 2, kind: input, shape index: {}]   ;;  %s1600_s3 = inlined_call_operand.hbm [shape: bf16[128,128], index: 3, kind: input, shape index: {}]   ;;  %s1601_s4 = inlined_call_operand.vmem [shape: bf16[128,128], index: 4, kind: input, shape index: {}]   ;;  %s1602_s5 = inlined_call_operand.hbm [shape: f32[1,128], index: 5, kind: input, shape index: {}]   ;;  %s1603_s6 = inlined_call_operand.hbm [shape: bf16[32,128], index: 6, kind: input, shape index: {}]   ;;  %s1604_s7 = inlined_call_operand.vmem [shape: bf16[16,32], index: 7, kind: input, shape index: {}]   ;;  %s1605_s8 = inlined_call_operand.vmem [shape: f32[16,1], index: 8, kind: input, shape index: {}]   ;;  %s1606_s9 = inlined_call_operand.hbm [shape: bf16[128,128], index: 9, kind: input, shape index: {}]   ;;  %s1607_s10 = inlined_call_operand.hbm [shape: bf16[128,128], index: 10, kind: input, shape index: {}]   ;;  %s1608_s11 = inlined_call_operand.vmem [shape: f32[1,128], index: 11, kind: input, shape index: {}]   ;;  %s1609_s12 = inlined_call_operand.hbm [shape: f32[16,128], index: 12, kind: output, shape index: {}]  }
   0x1   :  { %18 = vsyncpa [#allocation7], 0 }
   0x2   :  { %19 = vsyncpa [#allocation10], 0 }
   0x3   :  { %20 = vsyncpa [#allocation13], 0 }
   0x4   :  { %21 = vsyncpa [#allocation5], 0  ;;  %s1293_s21 = smov [#allocation6]   ;;  %s1294_s23 = smov [#allocation9]  }
   0x5   :  { %s41_s22 = sshll.u32 %s1293_s21, 4  ;;  %s68_s24 = sshll.u32 %s1294_s23, 4  ;;  %s42_s22 = int_to_ptr.vmem [resolvable:$true] %s41_s22  ;;  %s1373_s24 = int_to_ptr.vmem [resolvable:$true] %s68_s24 }
   0x6   :  { %s1107_s27 = scalar_lea.hbm %s1599_s2, 512 }
   0x7   :  { %p1108_p0 = scmp.ne.s32.totalorder %s1599_s2, %s1107_s27  ;;  %p1111_p1 = scmp.lt.u32.totalorder %s1107_s27, %s1599_s2 }
   0x9   :  { %p1113_p2 = pnand %p1111_p1, %p1108_p0 }
   0xb   :  { %1116 = shalt.err (!%p1113_p2)
}
   0xc   :  { %s1117_s14 = scalar_lea.vmem %s42_s22, 512  ;;  %p1122_p4 = scmp.lt.s32.totalorder %s42_s22, %s42_s22 }
   0xd   :  { %p1118_p3 = scmp.ne.s32.totalorder %s42_s22, %s1117_s14  ;;  %p1123_p5 = scmp.lt.s32.totalorder %s1117_s14, %s1117_s14 }
   0xf   :  { %p1124_p6 = por %p1123_p5, %p1122_p4 }
  0x11   :  { %p1125_p7 = pnand %p1124_p6, %p1118_p3 }
  0x13   :  { %1128 = shalt.err (!%p1125_p7)
}
  0x14   :  { %s1295_s15 = smov 64   ;;  %s1296_s16 = smov 4  }
  0x15   :  { %47 = dma.hbm_to_vmem [thread:$0]  %s1599_s2, 512, %s42_s22, [#allocation7], %s1295_s15, %s1295_s15, %s1296_s16  }
  0x16   :  { %s1129_s21 = scalar_lea.hbm %s1602_s5, 16 }
  0x17   :  { %p1130_p8 = scmp.ne.s32.totalorder %s1602_s5, %s1129_s21  ;;  %p1133_p9 = scmp.lt.u32.totalorder %s1129_s21, %s1602_s5 }
  0x19   :  { %p1135_p10 = pnand %p1133_p9, %p1130_p8 }
  0x1b   :  { %1138 = shalt.err (!%p1135_p10)
}
  0x1c   :  { %s1139_s28 = scalar_lea.vmem %s1373_s24, 16  ;;  %s1143_s2 = scalar_lea.vmem %s1373_s24, 32 }
  0x1d   :  { %p1140_p11 = scmp.ne.s32.totalorder %s1373_s24, %s1139_s28  ;;  %p1144_p12 = scmp.lt.s32.totalorder %s1373_s24, %s1373_s24 }
  0x1e   :  { %p1145_p13 = scmp.lt.s32.totalorder %s1143_s2, %s1139_s28 }
  0x20   :  { %p1146_p0 = por %p1145_p13, %p1144_p12 }
  0x22   :  { %p1147_p1 = pnand %p1146_p0, %p1140_p11 }
  0x24   :  { %1150 = shalt.err (!%p1147_p1)
}
  0x25   :  { %71 = dma.hbm_to_vmem [thread:$0]  %s1602_s5, 16, %s1373_s24, [#allocation10]  }
  0x26   :  { %s1297_s30 = smov [#allocation12]   ;;  %s1298_s14 = smov [#allocation3]  }
  0x27   :  { %s93_s13 = sshll.u32 %s1297_s30, 4  ;;  %s27_s17 = sshll.u32 %s1298_s14, 4  ;;  %s94_s13 = int_to_ptr.vmem [resolvable:$true] %s93_s13  ;;  %s1408_s17 = int_to_ptr.vmem [resolvable:$true] %s27_s17 }
  0x28   :  { %s1151_s20 = scalar_lea.hbm %s1606_s9, 1024 }
  0x29   :  { %p1152_p2 = scmp.ne.s32.totalorder %s1606_s9, %s1151_s20  ;;  %p1155_p3 = scmp.lt.u32.totalorder %s1151_s20, %s1606_s9 }
  0x2b   :  { %p1157_p4 = pnand %p1155_p3, %p1152_p2 }
  0x2d   :  { %1160 = shalt.err (!%p1157_p4)
}
  0x2e   :  { %s1161_s5 = scalar_lea.vmem %s94_s13, 1024  ;;  %p1166_p6 = scmp.lt.s32.totalorder %s94_s13, %s94_s13 }
  0x2f   :  { %p1162_p5 = scmp.ne.s32.totalorder %s94_s13, %s1161_s5  ;;  %p1167_p7 = scmp.lt.s32.totalorder %s1161_s5, %s1161_s5 }
  0x31   :  { %p1168_p8 = por %p1167_p7, %p1166_p6 }
  0x33   :  { %p1169_p9 = pnand %p1168_p8, %p1162_p5 }
  0x35   :  { %1172 = shalt.err (!%p1169_p9)
}
  0x36   :  { %99 = dma.hbm_to_vmem [thread:$0]  %s1606_s9, 1024, %s94_s13, [#allocation13], %s1295_s15, %s1295_s15, %s1296_s16  }
  0x37   :  { %s1173_s22 = scalar_lea.hbm %s1597_s0, 256 }
  0x38   :  { %p1174_p10 = scmp.ne.s32.totalorder %s1597_s0, %s1173_s22  ;;  %p1177_p11 = scmp.lt.u32.totalorder %s1173_s22, %s1597_s0 }
  0x3a   :  { %p1179_p12 = pnand %p1177_p11, %p1174_p10 }
  0x3c   :  { %1182 = shalt.err (!%p1179_p12)
}
  0x3d   :  { %s1183_s19 = scalar_lea.vmem %s1408_s17, 256  ;;  %p1188_p0 = scmp.lt.s32.totalorder %s1408_s17, %s1408_s17 }
  0x3e   :  { %p1184_p13 = scmp.ne.s32.totalorder %s1408_s17, %s1183_s19  ;;  %p1189_p1 = scmp.lt.s32.totalorder %s1183_s19, %s1183_s19 }
  0x40   :  { %p1190_p2 = por %p1189_p1, %p1188_p0 }
  0x42   :  { %p1191_p3 = pnand %p1190_p2, %p1184_p13 }
  0x44   :  { %1194 = shalt.err (!%p1191_p3)
}
  0x45   :  { %33 = dma.hbm_to_vmem [thread:$0]  %s1597_s0, 256, %s1408_s17, [#allocation4], %s1295_s15, %s1295_s15, %s1296_s16  }
  0x46   :  { %s1299_s20 = smov [#allocation8]   ;;  %s1300_s23 = smov [#allocation11]  }
  0x47   :  { %s53_s21 = sshll.u32 %s1299_s20, 4  ;;  %s77_s25 = sshll.u32 %s1300_s23, 4  ;;  %s54_s21 = int_to_ptr.vmem [resolvable:$true] %s53_s21  ;;  %s1445_s25 = int_to_ptr.vmem [resolvable:$true] %s77_s25 }
  0x48   :  { %s1195_s24 = scalar_lea.hbm %s1600_s3, 1024 }
  0x49   :  { %p1196_p4 = scmp.ne.s32.totalorder %s1600_s3, %s1195_s24  ;;  %p1199_p5 = scmp.lt.u32.totalorder %s1195_s24, %s1600_s3 }
  0x4b   :  { %p1201_p6 = pnand %p1199_p5, %p1196_p4 }
  0x4d   :  { %1204 = shalt.err (!%p1201_p6)
}
  0x4e   :  { %s1205_s0 = scalar_lea.vmem %s54_s21, 1024  ;;  %p1210_p8 = scmp.lt.s32.totalorder %s54_s21, %s54_s21 }
  0x4f   :  { %p1206_p7 = scmp.ne.s32.totalorder %s54_s21, %s1205_s0  ;;  %p1211_p9 = scmp.lt.s32.totalorder %s1205_s0, %s1205_s0 }
  0x51   :  { %p1212_p10 = por %p1211_p9, %p1210_p8 }
  0x53   :  { %p1213_p11 = pnand %p1212_p10, %p1206_p7 }
  0x55   :  { %1216 = shalt.err (!%p1213_p11)
}
  0x56   :  { %59 = dma.hbm_to_vmem [thread:$0]  %s1600_s3, 1024, %s54_s21, [#allocation7], %s1295_s15, %s1295_s15, %s1296_s16  }
  0x57   :  { %s1217_s18 = scalar_lea.hbm %s1603_s6, 256 }
  0x58   :  { %p1218_p12 = scmp.ne.s32.totalorder %s1603_s6, %s1217_s18  ;;  %p1221_p13 = scmp.lt.u32.totalorder %s1217_s18, %s1603_s6 }
  0x5a   :  { %p1223_p0 = pnand %p1221_p13, %p1218_p12 }
  0x5c   :  { %1226 = shalt.err (!%p1223_p0)
}
  0x5d   :  { %s1227_s23 = scalar_lea.vmem %s1445_s25, 256  ;;  %p1232_p2 = scmp.lt.s32.totalorder %s1445_s25, %s1445_s25 }
  0x5e   :  { %p1228_p1 = scmp.ne.s32.totalorder %s1445_s25, %s1227_s23  ;;  %p1233_p3 = scmp.lt.s32.totalorder %s1227_s23, %s1227_s23 }
  0x60   :  { %p1234_p4 = por %p1233_p3, %p1232_p2 }
  0x62   :  { %p1235_p5 = pnand %p1234_p4, %p1228_p1 }
  0x64   :  { %1238 = shalt.err (!%p1235_p5)
}
  0x65   :  { %83 = dma.hbm_to_vmem [thread:$0]  %s1603_s6, 256, %s1445_s25, [#allocation10], %s1295_s15, %s1295_s15, %s1296_s16  }
  0x66   :  { %s1301_s26 = smov [#allocation14]   ;;  %s1239_s28 = scalar_lea.hbm %s1607_s10, 1024 }
  0x67   :  { %s105_s5 = sshll.u32 %s1301_s26, 4  ;;  %p1240_p6 = scmp.ne.s32.totalorder %s1607_s10, %s1239_s28  ;;  %s106_s5 = int_to_ptr.vmem [resolvable:$true] %s105_s5 }
  0x68   :  { %p1243_p7 = scmp.lt.u32.totalorder %s1239_s28, %s1607_s10 }
  0x6a   :  { %p1245_p8 = pnand %p1243_p7, %p1240_p6 }
  0x6c   :  { %1248 = shalt.err (!%p1245_p8)
}
  0x6d   :  { %s1249_s29 = scalar_lea.vmem %s106_s5, 1024  ;;  %p1254_p10 = scmp.lt.s32.totalorder %s106_s5, %s106_s5 }
  0x6e   :  { %p1250_p9 = scmp.ne.s32.totalorder %s106_s5, %s1249_s29  ;;  %p1255_p11 = scmp.lt.s32.totalorder %s1249_s29, %s1249_s29 }
  0x70   :  { %p1256_p12 = por %p1255_p11, %p1254_p10 }
  0x72   :  { %p1257_p13 = pnand %p1256_p12, %p1250_p9 }
  0x74   :  { %1260 = shalt.err (!%p1257_p13)
}
  0x75   :  { %111 = dma.hbm_to_vmem [thread:$0]  %s1607_s10, 1024, %s106_s5, [#allocation13], %s1295_s15, %s1295_s15, %s1296_s16  }
  0x76   :  { %1283 = dma.done.wait [#allocation4], 256  }
  0x77   :  { %1284 = vsyncadd [#allocation4], 4294967040 }
  0x78   :  { %1285 = dma.done.wait [#allocation7], 1536  }
  0x79   :  { %1286 = vsyncadd [#allocation7], 4294965760 }
  0x7a   :  { %1287 = dma.done.wait [#allocation10], 272  }
  0x7b   :  { %1288 = vsyncadd [#allocation10], 4294967024 }
  0x7c   :  { %1289 = dma.done.wait [#allocation13], 2048  }
  0x7d   :  { %1290 = vsyncadd [#allocation13], 4294965248  ;;  %v1302_v0 = vmov 0   ;;  %v1497_v1 = vld [vmem:[#allocation6] sm:$0xff]   ;;  %v1499_v2 = vld [vmem:[#allocation6 + $0x8] sm:$0xff]   ;;  %vm186_vm0 = vcmask 523264  }
  0x7e   :  { %1066 = vset.pattern.permute.xlu0 %v1302_v0  ;;  %1067 = vset.pattern.permute.xlu1 %v1302_v0  ;;  %v1070_v3 = vld [vmem:[#allocation6 + $0x10] sm:$0xff]   ;;  %v244_v6 = vld [vmem:[%s1598_s1 + $0x10] sm:$0xff]  ;;  %v1071_v7 = vld [vmem:[#allocation6 + $0x18] sm:$0xff]   ;;  %v1303_v43 = vmov 0.0   ;;  %vm1304_vm1 = vmmov 0   ;;  %vm538_vm2 = vcmask 261120  }
  0x7f   :  { %947 = vmatprep.subr.bf16.mxu1 %v1497_v1  ;;  %v1072_v4 = vld [vmem:[#allocation3] sm:$0xff]   ;;  %258 = vperm.xlu1 %1067, %v244_v6   ;;  %v243_v8 = vld [vmem:[%s1598_s1 + $0x8] sm:$0xff]  ;;  %v245_v9 = vld [vmem:[%s1598_s1 + $0x18] sm:$0xff]  ;;  %s1305_s30 = smov [#allocation15]  }
  0x80   :  { %948 = vmatpush3.bf16.msra.mxu1 %v1497_v1  ;;  %955 = vmatprep.mubr.msk.bf16.mxu1 %vm186_vm0, %v1072_v4  ;;  %v242_v5 = vld [vmem:[%s1598_s1] sm:$0xff]  ;;  %v1073_v11 = vld [vmem:[#allocation3 + $0x8] sm:$0xff]   ;;  %v1076_v15 = vld [vmem:[%s1601_s4 + $0x10] sm:$0xff]   ;;  %s830_s14 = sshll.u32 %s1305_s30, 4  ;;  %s831_s14 = int_to_ptr.vmem [resolvable:$true] %s830_s14 }
  0x81   :  { %949 = vmatprep.subr.bf16.mxu1 %v1499_v2  ;;  %248 = vperm.xlu0 %1066, %v242_v5   ;;  %v583_v10 = vld [vmem:[%s1605_s8] sm:$0xff]  ;;  %v584_v13 = vld [vmem:[%s1605_s8 + $0x8] sm:$0xff]  ;;  %v1077_v16 = vld [vmem:[%s1601_s4 + $0x18] sm:$0xff]   ;;  %s1261_s18 = scalar_lea.vmem %s831_s14, 256  ;;  %p1266_p1 = scmp.lt.s32.totalorder %s831_s14, %s831_s14 }
  0x82   :  { %v1074_v12 = vld [vmem:[%s1601_s4] sm:$0xff]   ;;  %v1075_v14 = vld [vmem:[%s1601_s4 + $0x8] sm:$0xff]   ;;  %v1080_v19 = vld [vmem:[%s1601_s4 + $0x30] sm:$0xff]   ;;  %999 = vmatprep.subr.bf16.mxu0 %v1303_v43  ;;  %1003 = vmatprep.mubr.msk.bf16.mxu0 %vm1304_vm1, %v1303_v43  ;;  %p1262_p0 = scmp.ne.s32.totalorder %s831_s14, %s1261_s18  ;;  %p1267_p2 = scmp.lt.s32.totalorder %s1261_s18, %s1261_s18 }
  0x83   :  { %263 = vperm.xlu1 %1067, %v245_v9   ;;  %v1078_v17 = vld [vmem:[%s1601_s4 + $0x20] sm:$0xff]   ;;  %v1079_v18 = vld [vmem:[%s1601_s4 + $0x28] sm:$0xff]   ;;  %v1081_v20 = vld [vmem:[%s1601_s4 + $0x38] sm:$0xff]  }
  0x84   :  { %950 = vmatpush3.bf16.msra.mxu1 %v1499_v2  ;;  %v1082_v21 = vld [vmem:[#allocation8] sm:$0xff]   ;;  %v1083_v36 = vld [vmem:[#allocation8 + $0x8] sm:$0xff]   ;;  %v1084_v37 = vld [vmem:[#allocation8 + $0x10] sm:$0xff]   ;;  %p1268_p3 = por %p1267_p2, %p1266_p1 }
  0x85   :  { %951 = vmatprep.subr.bf16.mxu1 %v1070_v3  ;;  %253 = vperm.xlu0 %1066, %v243_v8   ;;  %v1085_v38 = vld [vmem:[#allocation8 + $0x18] sm:$0xff]   ;;  %v1086_v39 = vld [vmem:[#allocation8 + $0x20] sm:$0xff]   ;;  %v1087_v40 = vld [vmem:[#allocation8 + $0x28] sm:$0xff]  }
  0x86   :  { %v1088_v41 = vld [vmem:[#allocation8 + $0x30] sm:$0xff]   ;;  %v1089_v42 = vld [vmem:[#allocation8 + $0x38] sm:$0xff]   ;;  %v871_v44 = vld [vmem:[#allocation9] ss:$0 sm:$0xff]  ;;  %p1269_p4 = pnand %p1268_p3, %p1262_p0 }
  0x87   :  { %592 = vperm.xlu1 %1067, %v584_v13   ;;  %v899_v46 = vld [vmem:[#allocation11 + $0x8] sm:$0xff]   ;;  %v892_v49 = vld [vmem:[#allocation11] sm:$0xff]   ;;  %v1091_v6 = vld [vmem:[#allocation14] sm:$0xff]  }
  0x88   :  { %952 = vmatpush3.bf16.msra.mxu1 %v1070_v3  ;;  %v897_v53 = vunpack.c.l.bf16 %v899_v46  ;;  %v898_v55 = vunpack.c.h.bf16 %v899_v46  ;;  %v893_v58 = vunpack.c.l.bf16 %v892_v49  ;;  %v894_v60 = vunpack.c.h.bf16 %v892_v49  ;;  %v1090_v5 = vld [vmem:[%s1604_s7] sm:$0xff]   ;;  %v1093_v8 = vld [vmem:[#allocation14 + $0x10] sm:$0xff]  }
  0x89   :  { %953 = vmatprep.subr.bf16.mxu1 %v1071_v7  ;;  %587 = vperm.xlu0 %1066, %v583_v10   ;;  %v1094_v9 = vld [vmem:[#allocation14 + $0x18] sm:$0xff]   ;;  %v1095_v10 = vld [vmem:[#allocation14 + $0x20] sm:$0xff]  }
  0x8a   :  { %v1098_v13 = vld [vmem:[#allocation14 + $0x38] sm:$0xff]  }
  0x8c   :  { %954 = vmatpush3.bf16.msra.mxu1 %v1071_v7  ;;  %v1092_v7 = vld [vmem:[#allocation14 + $0x8] sm:$0xff]  }
  0x8d   :  { %959 = vmatprep.subr.bf16.mxu1 %v1074_v12 }
  0x8f   :  { %956 = vmatmul.mubr.msk.bf16.vlgmr.msra.gmra.mrb[0].mxu1 %vm186_vm0, %v1073_v11  ;;  %v1096_v11 = vld [vmem:[#allocation14 + $0x28] sm:$0xff]  }
  0x90   :  { %960 = vmatpush3.bf16.msra.mxu1 %v1074_v12  ;;  %v1097_v12 = vld [vmem:[#allocation14 + $0x30] sm:$0xff]  }
  0x91   :  { %961 = vmatprep.subr.bf16.mxu1 %v1075_v14 }
  0x94   :  { %962 = vmatpush3.bf16.msra.mxu1 %v1075_v14 }
  0x95   :  { %963 = vmatprep.subr.bf16.mxu1 %v1076_v15 }
  0x98   :  { %964 = vmatpush3.bf16.msra.mxu1 %v1076_v15 }
  0x99   :  { %965 = vmatprep.subr.bf16.mxu1 %v1077_v16 }
  0x9c   :  { %966 = vmatpush3.bf16.msra.mxu1 %v1077_v16 }
  0x9d   :  { %967 = vmatprep.subr.bf16.mxu1 %v1078_v17 }
  0xa0   :  { %968 = vmatpush3.bf16.msra.mxu1 %v1078_v17 }
  0xa1   :  { %969 = vmatprep.subr.bf16.mxu1 %v1079_v18 }
  0xa4   :  { %970 = vmatpush3.bf16.msra.mxu1 %v1079_v18 }
  0xa5   :  { %971 = vmatprep.subr.bf16.mxu1 %v1080_v19 }
  0xa8   :  { %972 = vmatpush3.bf16.msra.mxu1 %v1080_v19 }
  0xa9   :  { %973 = vmatprep.subr.bf16.mxu1 %v1081_v20 }
  0xac   :  { %974 = vmatpush3.bf16.msra.mxu1 %v1081_v20 }
  0xad   :  { %979 = vmatprep.subr.bf16.mxu1 %v1082_v21 }
  0xfe   :  { %v259_v22 = vpop.permute.xlu1 %258 }
 0x100   :  { %v249_v23 = vpop.permute.xlu0 %248 }
 0x102   :  { %v264_v26 = vpop.permute.xlu1 %263 }
 0x104   :  { %v254_v28 = vpop.permute.xlu0 %253 }
 0x106   :  { %v593_v17 = vpop.permute.xlu1 %592 }
 0x108   :  { %v588_v15 = vpop.permute.xlu0 %587 }
 0x162   :  { %v957_v24 = vpop.f32.mrb[0].mxu1 }
 0x163   :  { %v227_v25 = vpop.f32.mrb[1].mxu1  ;;  %v268_v29 = vmul.f32 %v957_v24, %v259_v22  ;;  %v1099_v22 = vld [vmem:[#allocation12] sm:$0xff]   ;;  %v1100_v24 = vld [vmem:[#allocation12 + $0x8] sm:$0xff]  }
 0x164   :  { %v958_v27 = vpop.f32.mrb[2].mxu1  ;;  %v266_v32 = vmul.f32 %v249_v23, %v227_v25  ;;  %v1101_v25 = vld [vmem:[#allocation12 + $0x10] sm:$0xff]  }
 0x165   :  { %v269_v30 = vmul.f32 %v958_v27, %v264_v26  ;;  %v230_v31 = vpop.f32.mrb[3].mxu1  ;;  %v1102_v26 = vld [vmem:[#allocation12 + $0x18] sm:$0xff]   ;;  %v1103_v27 = vld [vmem:[#allocation12 + $0x20] sm:$0xff]  }
 0x166   :  { %v267_v33 = vmul.f32 %v254_v28, %v230_v31  ;;  %v1104_v28 = vld [vmem:[#allocation12 + $0x28] sm:$0xff]  }
 0x167   :  { %v287_v34 = vpack.c.bf16 %v269_v30, %v268_v29  ;;  %v1105_v29 = vld [vmem:[#allocation12 + $0x30] sm:$0xff]   ;;  %v1106_v30 = vld [vmem:[#allocation12 + $0x38] sm:$0xff]  }
 0x168   :  { %v286_v35 = vpack.c.bf16 %v267_v33, %v266_v32 }
 0x16a   :  { %975 = vmatprep.mubr.bf16.mxu1 %v286_v35 }
 0x16b   :  { %976 = vmatmul.mubr.bf16.vlgmr.msra.gmra.mrb[4].mxu1 %v287_v34 }
 0x16c   :  { %980 = vmatpush3.bf16.msra.mxu1 %v1082_v21  ;;  %995 = vmatprep.mubr.bf16.mxu1 %v1497_v1 }
 0x16d   :  { %981 = vmatprep.subr.bf16.mxu1 %v1083_v36 }
 0x170   :  { %982 = vmatpush3.bf16.msra.mxu1 %v1083_v36  ;;  %v890_v36 = vld [vmem:[%s1608_s11] ss:$0 sm:$0xff] }
 0x171   :  { %983 = vmatprep.subr.bf16.mxu1 %v1084_v37 }
 0x174   :  { %984 = vmatpush3.bf16.msra.mxu1 %v1084_v37 }
 0x175   :  { %985 = vmatprep.subr.bf16.mxu1 %v1085_v38 }
 0x178   :  { %986 = vmatpush3.bf16.msra.mxu1 %v1085_v38 }
 0x179   :  { %987 = vmatprep.subr.bf16.mxu1 %v1086_v39 }
 0x17c   :  { %988 = vmatpush3.bf16.msra.mxu1 %v1086_v39 }
 0x17d   :  { %989 = vmatprep.subr.bf16.mxu1 %v1087_v40 }
 0x180   :  { %990 = vmatpush3.bf16.msra.mxu1 %v1087_v40 }
 0x181   :  { %991 = vmatprep.subr.bf16.mxu1 %v1088_v41 }
 0x184   :  { %992 = vmatpush3.bf16.msra.mxu1 %v1088_v41 }
 0x185   :  { %993 = vmatprep.subr.bf16.mxu1 %v1089_v42 }
 0x188   :  { %994 = vmatpush3.bf16.msra.mxu1 %v1089_v42 }
 0x18b   :  { %996 = vmatmul.mubr.bf16.vlgmr.msra.gmra.mrb[4].mxu1 %v1499_v2 }
 0x25e   :  { %v997_v45 = vpop.f32.mrb[4].mxu1 }
 0x25f   :  { %v507_v47 = vadd.f32 %v997_v45, %v871_v44  ;;  %v483_v48 = vpop.f32.mrb[5].mxu1 }
 0x260   :  { %v505_v50 = vadd.f32 %v871_v44, %v483_v48  ;;  %v998_v51 = vpop.f32.mrb[6].mxu1 }
 0x261   :  { %v511_v52 = vmax.f32 %v507_v47, 0.0  ;;  %v508_v54 = vadd.f32 %v998_v51, %v871_v44  ;;  %v486_v56 = vpop.f32.mrb[7].mxu1 }
 0x262   :  { %v509_v57 = vmax.f32 %v505_v50, 0.0  ;;  %v506_v59 = vadd.f32 %v871_v44, %v486_v56 }
 0x263   :  { %v512_v61 = vmax.f32 %v508_v54, 0.0  ;;  %v523_v63 = vmul.f32 %v897_v53, %v511_v52 }
 0x264   :  { %v510_v62 = vmax.f32 %v506_v59, 0.0  ;;  %v521_v1 = vmul.f32 %v893_v58, %v509_v57 }
 0x265   :  { %v524_v0 = vmul.f32 %v898_v55, %v512_v61 }
 0x266   :  { %v522_v2 = vmul.f32 %v894_v60, %v510_v62 }
 0x267   :  { %v526_v3 = vpack.c.bf16 %v524_v0, %v523_v63 }
 0x268   :  { %v1554_v4 = vpack.c.bf16 %v522_v2, %v521_v1 }
 0x26a   :  { %1000 = vmatpush3.bf16.msra.mxu0 %v1554_v4 }
 0x26b   :  { %1001 = vmatprep.subr.bf16.mxu0 %v1303_v43 }
 0x26e   :  { %1002 = vmatpush3.bf16.msra.mxu0 %v526_v3 }
 0x26f   :  { %1007 = vmatprep.subr.bf16.mxu0 %v1303_v43 }
 0x271   :  { %1004 = vmatmul.mubr.msk.bf16.vlgmr.msra.gmra.mrb[0].mxu0 %vm538_vm2, %v1090_v5 }
 0x272   :  { %1008 = vmatpush3.bf16.msra.mxu0 %v1091_v6  ;;  %1023 = vmatprep.mubr.msk.bf16.mxu0 %vm1304_vm1, %v1303_v43 }
 0x273   :  { %1009 = vmatprep.subr.bf16.mxu0 %v1303_v43 }
 0x276   :  { %1010 = vmatpush3.bf16.msra.mxu0 %v1092_v7 }
 0x277   :  { %1011 = vmatprep.subr.bf16.mxu0 %v1303_v43 }
 0x27a   :  { %1012 = vmatpush3.bf16.msra.mxu0 %v1093_v8 }
 0x27b   :  { %1013 = vmatprep.subr.bf16.mxu0 %v1303_v43 }
 0x27e   :  { %1014 = vmatpush3.bf16.msra.mxu0 %v1094_v9 }
 0x27f   :  { %1015 = vmatprep.subr.bf16.mxu0 %v1303_v43 }
 0x282   :  { %1016 = vmatpush3.bf16.msra.mxu0 %v1095_v10 }
 0x283   :  { %1017 = vmatprep.subr.bf16.mxu0 %v1303_v43 }
 0x286   :  { %1018 = vmatpush3.bf16.msra.mxu0 %v1096_v11 }
 0x287   :  { %1019 = vmatprep.subr.bf16.mxu0 %v1303_v43 }
 0x28a   :  { %1020 = vmatpush3.bf16.msra.mxu0 %v1097_v12 }
 0x28b   :  { %1021 = vmatprep.subr.bf16.mxu0 %v1303_v43 }
 0x28e   :  { %1022 = vmatpush3.bf16.msra.mxu0 %v1098_v13 }
 0x28f   :  { %1027 = vmatprep.subr.bf16.mxu0 %v1303_v43 }
 0x344   :  { %v576_v14 = vpop.f32.mrb[0].mxu0 }
 0x345   :  { %v1005_v16 = vpop.f32.mrb[1].mxu0  ;;  %v595_v19 = vmul.f32 %v588_v15, %v576_v14 }
 0x346   :  { %v579_v18 = vpop.f32.mrb[2].mxu0 }
 0x347   :  { %v596_v20 = vmul.f32 %v593_v17, %v579_v18  ;;  %v1006_v21 = vpop.f32.mrb[3].mxu0 }
 0x349   :  { %v597_v23 = vpack.c.bf16 %v596_v20, %v595_v19 }
 0x34b   :  { %1024 = vmatmul.mubr.bf16.vlgmr.msra.gmra.mrb[4].mxu0 %v597_v23 }
 0x34c   :  { %1028 = vmatpush3.bf16.msra.mxu0 %v1099_v22  ;;  %1043 = vmatprep.mubr.msk.bf16.mxu0 %vm1304_vm1, %v1303_v43 }
 0x34d   :  { %1029 = vmatprep.subr.bf16.mxu0 %v1303_v43 }
 0x350   :  { %1030 = vmatpush3.bf16.msra.mxu0 %v1100_v24 }
 0x351   :  { %1031 = vmatprep.subr.bf16.mxu0 %v1303_v43 }
 0x354   :  { %1032 = vmatpush3.bf16.msra.mxu0 %v1101_v25 }
 0x355   :  { %1033 = vmatprep.subr.bf16.mxu0 %v1303_v43 }
 0x358   :  { %1034 = vmatpush3.bf16.msra.mxu0 %v1102_v26 }
 0x359   :  { %1035 = vmatprep.subr.bf16.mxu0 %v1303_v43 }
 0x35c   :  { %1036 = vmatpush3.bf16.msra.mxu0 %v1103_v27 }
 0x35d   :  { %1037 = vmatprep.subr.bf16.mxu0 %v1303_v43 }
 0x360   :  { %1038 = vmatpush3.bf16.msra.mxu0 %v1104_v28 }
 0x361   :  { %1039 = vmatprep.subr.bf16.mxu0 %v1303_v43 }
 0x364   :  { %1040 = vmatpush3.bf16.msra.mxu0 %v1105_v29 }
 0x365   :  { %1041 = vmatprep.subr.bf16.mxu0 %v1303_v43 }
 0x368   :  { %1042 = vmatpush3.bf16.msra.mxu0 %v1106_v30 }
 0x36b   :  { %1044 = vmatmul.mubr.bf16.vlgmr.msra.gmra.mrb[8].mxu0 %v1554_v4 }
 0x41e   :  { %v718_v31 = vpop.f32.mrb[4].mxu0 }
 0x41f   :  { %v1025_v32 = vpop.f32.mrb[5].mxu0 }
 0x420   :  { %v721_v33 = vpop.f32.mrb[6].mxu0 }
 0x421   :  { %v1026_v34 = vpop.f32.mrb[7].mxu0 }
 0x43e   :  { %v807_v35 = vpop.f32.mrb[8].mxu0 }
 0x43f   :  { %v808_v37 = vadd.f32 %v807_v35, %v718_v31  ;;  %v1045_v38 = vpop.f32.mrb[9].mxu0 }
 0x440   :  { %v810_v39 = vpop.f32.mrb[10].mxu0 }
 0x441   :  { %v821_v40 = vadd.f32 %v890_v36, %v808_v37  ;;  %v811_v41 = vadd.f32 %v810_v39, %v721_v33  ;;  %v1046_v42 = vpop.f32.mrb[11].mxu0 }
 0x443   :  { %823 = vst [vmem:[#allocation15] sm:$0xff] %v821_v40  ;;  %v822_v43 = vadd.f32 %v890_v36, %v811_v41 }
 0x445   :  { %824 = vst [vmem:[#allocation15 + $0x8] sm:$0xff] %v822_v43 }
 0x446   :  { %1272 = shalt.err (!%p1269_p4)
}
 0x447   :  { %s1273_s9 = scalar_lea.hbm %s1609_s12, 256 }
 0x448   :  { %p1274_p5 = scmp.ne.s32.totalorder %s1609_s12, %s1273_s9  ;;  %p1277_p6 = scmp.lt.u32.totalorder %s1273_s9, %s1609_s12 }
 0x44a   :  { %p1279_p7 = pnand %p1277_p6, %p1274_p5 }
 0x44c   :  { %1282 = shalt.err (!%p1279_p7)
}
 0x44d   :  { %s1306_s21 = smov 128   ;;  %s1307_s26 = smov 8  }
 0x44e   :  { %836 = dma.vmem_to_hbm [thread:$0]  %s831_s14, 256, %s1609_s12, [#allocation5], %s1306_s21, %s1306_s21, %s1307_s26  }
 0x44f   :  { %1291 = dma.done.wait [#allocation5], 256  }
 0x450   :  { %1292 = vsyncadd [#allocation5], 4294967040 }
 0x451   :  { %840 = vsyncpa [#allocation4], 1 }
 0x452   :  { %841 = vsyncpa [#allocation7], 1 }
 0x453   :  { %842 = vsyncpa [#allocation10], 1 }
 0x454   :  { %843 = vsyncpa [#allocation13], 1 }
 0x455   :  { %844 = vsyncpa [#allocation5], 1 }

// kernel: tpu_custom_call.1
= control target key start
LH: loop header
LB: loop body
LE: loop exit
PB: predicated region body
PF: predicated region fallthrough
CT: control target
= control target key end

     0   :  { %17 = vsyncpa [#allocation4], 0  ;;  %s1597_s0 = inlined_call_operand.hbm [shape: bf16[32,64], index: 0, kind: input, shape index: {}]   ;;  %s1598_s1 = inlined_call_operand.vmem [shape: f32[32,1], index: 1, kind: input, shape index: {}]   ;;  %s1599_s2 = inlined_call_operand.hbm [shape: bf16[64,128], index: 2, kind: input, shape index: {}]   ;;  %s1600_s3 = inlined_call_operand.hbm [shape: bf16[128,128], index: 3, kind: input, shape index: {}]   ;;  %s1601_s4 = inlined_call_operand.vmem [shape: bf16[128,128], index: 4, kind: input, shape index: {}]   ;;  %s1602_s5 = inlined_call_operand.hbm [shape: f32[1,128], index: 5, kind: input, shape index: {}]   ;;  %s1603_s6 = inlined_call_operand.hbm [shape: bf16[32,128], index: 6, kind: input, shape index: {}]   ;;  %s1604_s7 = inlined_call_operand.vmem [shape: bf16[16,32], index: 7, kind: input, shape index: {}]   ;;  %s1605_s8 = inlined_call_operand.vmem [shape: f32[16,1], index: 8, kind: input, shape index: {}]   ;;  %s1606_s9 = inlined_call_operand.hbm [shape: bf16[128,128], index: 9, kind: input, shape index: {}]   ;;  %s1607_s10 = inlined_call_operand.hbm [shape: bf16[128,128], index: 10, kind: input, shape index: {}]   ;;  %s1608_s11 = inlined_call_operand.vmem [shape: f32[1,128], index: 11, kind: input, shape index: {}]   ;;  %s1609_s12 = inlined_call_operand.hbm [shape: f32[16,128], index: 12, kind: output, shape index: {}]  }
   0x1   :  { %18 = vsyncpa [#allocation7], 0 }
   0x2   :  { %19 = vsyncpa [#allocation10], 0 }
   0x3   :  { %20 = vsyncpa [#allocation13], 0 }
   0x4   :  { %21 = vsyncpa [#allocation5], 0  ;;  %s1293_s21 = smov [#allocation6]   ;;  %s1294_s23 = smov [#allocation9]  }
   0x5   :  { %s41_s22 = sshll.u32 %s1293_s21, 4  ;;  %s68_s24 = sshll.u32 %s1294_s23, 4  ;;  %s42_s22 = int_to_ptr.vmem [resolvable:$true] %s41_s22  ;;  %s1373_s24 = int_to_ptr.vmem [resolvable:$true] %s68_s24 }
   0x6   :  { %s1107_s27 = scalar_lea.hbm %s1599_s2, 512 }
   0x7   :  { %p1108_p0 = scmp.ne.s32.totalorder %s1599_s2, %s1107_s27  ;;  %p1111_p1 = scmp.lt.u32.totalorder %s1107_s27, %s1599_s2 }
   0x9   :  { %p1113_p2 = pnand %p1111_p1, %p1108_p0 }
   0xb   :  { %1116 = shalt.err (!%p1113_p2)
}
   0xc   :  { %s1117_s14 = scalar_lea.vmem %s42_s22, 512  ;;  %p1122_p4 = scmp.lt.s32.totalorder %s42_s22, %s42_s22 }
   0xd   :  { %p1118_p3 = scmp.ne.s32.totalorder %s42_s22, %s1117_s14  ;;  %p1123_p5 = scmp.lt.s32.totalorder %s1117_s14, %s1117_s14 }
   0xf   :  { %p1124_p6 = por %p1123_p5, %p1122_p4 }
  0x11   :  { %p1125_p7 = pnand %p1124_p6, %p1118_p3 }
  0x13   :  { %1128 = shalt.err (!%p1125_p7)
}
  0x14   :  { %s1295_s15 = smov 64   ;;  %s1296_s16 = smov 4  }
  0x15   :  { %47 = dma.hbm_to_vmem [thread:$0]  %s1599_s2, 512, %s42_s22, [#allocation7], %s1295_s15, %s1295_s15, %s1296_s16  }
  0x16   :  { %s1129_s21 = scalar_lea.hbm %s1602_s5, 16 }
  0x17   :  { %p1130_p8 = scmp.ne.s32.totalorder %s1602_s5, %s1129_s21  ;;  %p1133_p9 = scmp.lt.u32.totalorder %s1129_s21, %s1602_s5 }
  0x19   :  { %p1135_p10 = pnand %p1133_p9, %p1130_p8 }
  0x1b   :  { %1138 = shalt.err (!%p1135_p10)
}
  0x1c   :  { %s1139_s28 = scalar_lea.vmem %s1373_s24, 16  ;;  %s1143_s2 = scalar_lea.vmem %s1373_s24, 32 }
  0x1d   :  { %p1140_p11 = scmp.ne.s32.totalorder %s1373_s24, %s1139_s28  ;;  %p1144_p12 = scmp.lt.s32.totalorder %s1373_s24, %s1373_s24 }
  0x1e   :  { %p1145_p13 = scmp.lt.s32.totalorder %s1143_s2, %s1139_s28 }
  0x20   :  { %p1146_p0 = por %p1145_p13, %p1144_p12 }
  0x22   :  { %p1147_p1 = pnand %p1146_p0, %p1140_p11 }
  0x24   :  { %1150 = shalt.err (!%p1147_p1)
}
  0x25   :  { %71 = dma.hbm_to_vmem [thread:$0]  %s1602_s5, 16, %s1373_s24, [#allocation10]  }
  0x26   :  { %s1297_s30 = smov [#allocation12]   ;;  %s1298_s14 = smov [#allocation3]  }
  0x27   :  { %s93_s13 = sshll.u32 %s1297_s30, 4  ;;  %s27_s17 = sshll.u32 %s1298_s14, 4  ;;  %s94_s13 = int_to_ptr.vmem [resolvable:$true] %s93_s13  ;;  %s1408_s17 = int_to_ptr.vmem [resolvable:$true] %s27_s17 }
  0x28   :  { %s1151_s20 = scalar_lea.hbm %s1606_s9, 1024 }
  0x29   :  { %p1152_p2 = scmp.ne.s32.totalorder %s1606_s9, %s1151_s20  ;;  %p1155_p3 = scmp.lt.u32.totalorder %s1151_s20, %s1606_s9 }
  0x2b   :  { %p1157_p4 = pnand %p1155_p3, %p1152_p2 }
  0x2d   :  { %1160 = shalt.err (!%p1157_p4)
}
  0x2e   :  { %s1161_s5 = scalar_lea.vmem %s94_s13, 1024  ;;  %p1166_p6 = scmp.lt.s32.totalorder %s94_s13, %s94_s13 }
  0x2f   :  { %p1162_p5 = scmp.ne.s32.totalorder %s94_s13, %s1161_s5  ;;  %p1167_p7 = scmp.lt.s32.totalorder %s1161_s5, %s1161_s5 }
  0x31   :  { %p1168_p8 = por %p1167_p7, %p1166_p6 }
  0x33   :  { %p1169_p9 = pnand %p1168_p8, %p1162_p5 }
  0x35   :  { %1172 = shalt.err (!%p1169_p9)
}
  0x36   :  { %99 = dma.hbm_to_vmem [thread:$0]  %s1606_s9, 1024, %s94_s13, [#allocation13], %s1295_s15, %s1295_s15, %s1296_s16  }
  0x37   :  { %s1173_s22 = scalar_lea.hbm %s1597_s0, 256 }
  0x38   :  { %p1174_p10 = scmp.ne.s32.totalorder %s1597_s0, %s1173_s22  ;;  %p1177_p11 = scmp.lt.u32.totalorder %s1173_s22, %s1597_s0 }
  0x3a   :  { %p1179_p12 = pnand %p1177_p11, %p1174_p10 }
  0x3c   :  { %1182 = shalt.err (!%p1179_p12)
}
  0x3d   :  { %s1183_s19 = scalar_lea.vmem %s1408_s17, 256  ;;  %p1188_p0 = scmp.lt.s32.totalorder %s1408_s17, %s1408_s17 }
  0x3e   :  { %p1184_p13 = scmp.ne.s32.totalorder %s1408_s17, %s1183_s19  ;;  %p1189_p1 = scmp.lt.s32.totalorder %s1183_s19, %s1183_s19 }
  0x40   :  { %p1190_p2 = por %p1189_p1, %p1188_p0 }
  0x42   :  { %p1191_p3 = pnand %p1190_p2, %p1184_p13 }
  0x44   :  { %1194 = shalt.err (!%p1191_p3)
}
  0x45   :  { %33 = dma.hbm_to_vmem [thread:$0]  %s1597_s0, 256, %s1408_s17, [#allocation4], %s1295_s15, %s1295_s15, %s1296_s16  }
  0x46   :  { %s1299_s20 = smov [#allocation8]   ;;  %s1300_s23 = smov [#allocation11]  }
  0x47   :  { %s53_s21 = sshll.u32 %s1299_s20, 4  ;;  %s77_s25 = sshll.u32 %s1300_s23, 4  ;;  %s54_s21 = int_to_ptr.vmem [resolvable:$true] %s53_s21  ;;  %s1445_s25 = int_to_ptr.vmem [resolvable:$true] %s77_s25 }
  0x48   :  { %s1195_s24 = scalar_lea.hbm %s1600_s3, 1024 }
  0x49   :  { %p1196_p4 = scmp.ne.s32.totalorder %s1600_s3, %s1195_s24  ;;  %p1199_p5 = scmp.lt.u32.totalorder %s1195_s24, %s1600_s3 }
  0x4b   :  { %p1201_p6 = pnand %p1199_p5, %p1196_p4 }
  0x4d   :  { %1204 = shalt.err (!%p1201_p6)
}
  0x4e   :  { %s1205_s0 = scalar_lea.vmem %s54_s21, 1024  ;;  %p1210_p8 = scmp.lt.s32.totalorder %s54_s21, %s54_s21 }
  0x4f   :  { %p1206_p7 = scmp.ne.s32.totalorder %s54_s21, %s1205_s0  ;;  %p1211_p9 = scmp.lt.s32.totalorder %s1205_s0, %s1205_s0 }
  0x51   :  { %p1212_p10 = por %p1211_p9, %p1210_p8 }
  0x53   :  { %p1213_p11 = pnand %p1212_p10, %p1206_p7 }
  0x55   :  { %1216 = shalt.err (!%p1213_p11)
}
  0x56   :  { %59 = dma.hbm_to_vmem [thread:$0]  %s1600_s3, 1024, %s54_s21, [#allocation7], %s1295_s15, %s1295_s15, %s1296_s16  }
  0x57   :  { %s1217_s18 = scalar_lea.hbm %s1603_s6, 256 }
  0x58   :  { %p1218_p12 = scmp.ne.s32.totalorder %s1603_s6, %s1217_s18  ;;  %p1221_p13 = scmp.lt.u32.totalorder %s1217_s18, %s1603_s6 }
  0x5a   :  { %p1223_p0 = pnand %p1221_p13, %p1218_p12 }
  0x5c   :  { %1226 = shalt.err (!%p1223_p0)
}
  0x5d   :  { %s1227_s23 = scalar_lea.vmem %s1445_s25, 256  ;;  %p1232_p2 = scmp.lt.s32.totalorder %s1445_s25, %s1445_s25 }
  0x5e   :  { %p1228_p1 = scmp.ne.s32.totalorder %s1445_s25, %s1227_s23  ;;  %p1233_p3 = scmp.lt.s32.totalorder %s1227_s23, %s1227_s23 }
  0x60   :  { %p1234_p4 = por %p1233_p3, %p1232_p2 }
  0x62   :  { %p1235_p5 = pnand %p1234_p4, %p1228_p1 }
  0x64   :  { %1238 = shalt.err (!%p1235_p5)
}
  0x65   :  { %83 = dma.hbm_to_vmem [thread:$0]  %s1603_s6, 256, %s1445_s25, [#allocation10], %s1295_s15, %s1295_s15, %s1296_s16  }
  0x66   :  { %s1301_s26 = smov [#allocation14]   ;;  %s1239_s28 = scalar_lea.hbm %s1607_s10, 1024 }
  0x67   :  { %s105_s5 = sshll.u32 %s1301_s26, 4  ;;  %p1240_p6 = scmp.ne.s32.totalorder %s1607_s10, %s1239_s28  ;;  %s106_s5 = int_to_ptr.vmem [resolvable:$true] %s105_s5 }
  0x68   :  { %p1243_p7 = scmp.lt.u32.totalorder %s1239_s28, %s1607_s10 }
  0x6a   :  { %p1245_p8 = pnand %p1243_p7, %p1240_p6 }
  0x6c   :  { %1248 = shalt.err (!%p1245_p8)
}
  0x6d   :  { %s1249_s29 = scalar_lea.vmem %s106_s5, 1024  ;;  %p1254_p10 = scmp.lt.s32.totalorder %s106_s5, %s106_s5 }
  0x6e   :  { %p1250_p9 = scmp.ne.s32.totalorder %s106_s5, %s1249_s29  ;;  %p1255_p11 = scmp.lt.s32.totalorder %s1249_s29, %s1249_s29 }
  0x70   :  { %p1256_p12 = por %p1255_p11, %p1254_p10 }
  0x72   :  { %p1257_p13 = pnand %p1256_p12, %p1250_p9 }
  0x74   :  { %1260 = shalt.err (!%p1257_p13)
}
  0x75   :  { %111 = dma.hbm_to_vmem [thread:$0]  %s1607_s10, 1024, %s106_s5, [#allocation13], %s1295_s15, %s1295_s15, %s1296_s16  }
  0x76   :  { %1283 = dma.done.wait [#allocation4], 256  }
  0x77   :  { %1284 = vsyncadd [#allocation4], 4294967040 }
  0x78   :  { %1285 = dma.done.wait [#allocation7], 1536  }
  0x79   :  { %1286 = vsyncadd [#allocation7], 4294965760 }
  0x7a   :  { %1287 = dma.done.wait [#allocation10], 272  }
  0x7b   :  { %1288 = vsyncadd [#allocation10], 4294967024 }
  0x7c   :  { %1289 = dma.done.wait [#allocation13], 2048  }
  0x7d   :  { %1290 = vsyncadd [#allocation13], 4294965248  ;;  %v1302_v0 = vmov 0   ;;  %v1497_v1 = vld [vmem:[#allocation6] sm:$0xff]   ;;  %v1499_v2 = vld [vmem:[#allocation6 + $0x8] sm:$0xff]   ;;  %vm186_vm0 = vcmask 523264  }
  0x7e   :  { %1066 = vset.pattern.permute.xlu0 %v1302_v0  ;;  %1067 = vset.pattern.permute.xlu1 %v1302_v0  ;;  %v1070_v3 = vld [vmem:[#allocation6 + $0x10] sm:$0xff]   ;;  %v244_v6 = vld [vmem:[%s1598_s1 + $0x10] sm:$0xff]  ;;  %v1071_v7 = vld [vmem:[#allocation6 + $0x18] sm:$0xff]   ;;  %v1303_v43 = vmov 0.0   ;;  %vm1304_vm1 = vmmov 0   ;;  %vm538_vm2 = vcmask 261120  }
  0x7f   :  { %947 = vmatprep.subr.bf16.mxu1 %v1497_v1  ;;  %v1072_v4 = vld [vmem:[#allocation3] sm:$0xff]   ;;  %258 = vperm.xlu1 %1067, %v244_v6   ;;  %v243_v8 = vld [vmem:[%s1598_s1 + $0x8] sm:$0xff]  ;;  %v245_v9 = vld [vmem:[%s1598_s1 + $0x18] sm:$0xff]  ;;  %s1305_s30 = smov [#allocation15]  }
  0x80   :  { %948 = vmatpush3.bf16.msra.mxu1 %v1497_v1  ;;  %955 = vmatprep.mubr.msk.bf16.mxu1 %vm186_vm0, %v1072_v4  ;;  %v242_v5 = vld [vmem:[%s1598_s1] sm:$0xff]  ;;  %v1073_v11 = vld [vmem:[#allocation3 + $0x8] sm:$0xff]   ;;  %v1076_v15 = vld [vmem:[%s1601_s4 + $0x10] sm:$0xff]   ;;  %s830_s14 = sshll.u32 %s1305_s30, 4  ;;  %s831_s14 = int_to_ptr.vmem [resolvable:$true] %s830_s14 }
  0x81   :  { %949 = vmatprep.subr.bf16.mxu1 %v1499_v2  ;;  %248 = vperm.xlu0 %1066, %v242_v5   ;;  %v583_v10 = vld [vmem:[%s1605_s8] sm:$0xff]  ;;  %v584_v13 = vld [vmem:[%s1605_s8 + $0x8] sm:$0xff]  ;;  %v1077_v16 = vld [vmem:[%s1601_s4 + $0x18] sm:$0xff]   ;;  %s1261_s18 = scalar_lea.vmem %s831_s14, 256  ;;  %p1266_p1 = scmp.lt.s32.totalorder %s831_s14, %s831_s14 }
  0x82   :  { %v1074_v12 = vld [vmem:[%s1601_s4] sm:$0xff]   ;;  %v1075_v14 = vld [vmem:[%s1601_s4 + $0x8] sm:$0xff]   ;;  %v1080_v19 = vld [vmem:[%s1601_s4 + $0x30] sm:$0xff]   ;;  %999 = vmatprep.subr.bf16.mxu0 %v1303_v43  ;;  %1003 = vmatprep.mubr.msk.bf16.mxu0 %vm1304_vm1, %v1303_v43  ;;  %p1262_p0 = scmp.ne.s32.totalorder %s831_s14, %s1261_s18  ;;  %p1267_p2 = scmp.lt.s32.totalorder %s1261_s18, %s1261_s18 }
  0x83   :  { %263 = vperm.xlu1 %1067, %v245_v9   ;;  %v1078_v17 = vld [vmem:[%s1601_s4 + $0x20] sm:$0xff]   ;;  %v1079_v18 = vld [vmem:[%s1601_s4 + $0x28] sm:$0xff]   ;;  %v1081_v20 = vld [vmem:[%s1601_s4 + $0x38] sm:$0xff]  }
  0x84   :  { %950 = vmatpush3.bf16.msra.mxu1 %v1499_v2  ;;  %v1082_v21 = vld [vmem:[#allocation8] sm:$0xff]   ;;  %v1083_v36 = vld [vmem:[#allocation8 + $0x8] sm:$0xff]   ;;  %v1084_v37 = vld [vmem:[#allocation8 + $0x10] sm:$0xff]   ;;  %p1268_p3 = por %p1267_p2, %p1266_p1 }
  0x85   :  { %951 = vmatprep.subr.bf16.mxu1 %v1070_v3  ;;  %253 = vperm.xlu0 %1066, %v243_v8   ;;  %v1085_v38 = vld [vmem:[#allocation8 + $0x18] sm:$0xff]   ;;  %v1086_v39 = vld [vmem:[#allocation8 + $0x20] sm:$0xff]   ;;  %v1087_v40 = vld [vmem:[#allocation8 + $0x28] sm:$0xff]  }
  0x86   :  { %v1088_v41 = vld [vmem:[#allocation8 + $0x30] sm:$0xff]   ;;  %v1089_v42 = vld [vmem:[#allocation8 + $0x38] sm:$0xff]   ;;  %v871_v44 = vld [vmem:[#allocation9] ss:$0 sm:$0xff]  ;;  %p1269_p4 = pnand %p1268_p3, %p1262_p0 }
  0x87   :  { %592 = vperm.xlu1 %1067, %v584_v13   ;;  %v899_v46 = vld [vmem:[#allocation11 + $0x8] sm:$0xff]   ;;  %v892_v49 = vld [vmem:[#allocation11] sm:$0xff]   ;;  %v1091_v6 = vld [vmem:[#allocation14] sm:$0xff]  }
  0x88   :  { %952 = vmatpush3.bf16.msra.mxu1 %v1070_v3  ;;  %v897_v53 = vunpack.c.l.bf16 %v899_v46  ;;  %v898_v55 = vunpack.c.h.bf16 %v899_v46  ;;  %v893_v58 = vunpack.c.l.bf16 %v892_v49  ;;  %v894_v60 = vunpack.c.h.bf16 %v892_v49  ;;  %v1090_v5 = vld [vmem:[%s1604_s7] sm:$0xff]   ;;  %v1093_v8 = vld [vmem:[#allocation14 + $0x10] sm:$0xff]  }
  0x89   :  { %953 = vmatprep.subr.bf16.mxu1 %v1071_v7  ;;  %587 = vperm.xlu0 %1066, %v583_v10   ;;  %v1094_v9 = vld [vmem:[#allocation14 + $0x18] sm:$0xff]   ;;  %v1095_v10 = vld [vmem:[#allocation14 + $0x20] sm:$0xff]  }
  0x8a   :  { %v1098_v13 = vld [vmem:[#allocation14 + $0x38] sm:$0xff]  }
  0x8c   :  { %954 = vmatpush3.bf16.msra.mxu1 %v1071_v7  ;;  %v1092_v7 = vld [vmem:[#allocation14 + $0x8] sm:$0xff]  }
  0x8d   :  { %959 = vmatprep.subr.bf16.mxu1 %v1074_v12 }
  0x8f   :  { %956 = vmatmul.mubr.msk.bf16.vlgmr.msra.gmra.mrb[0].mxu1 %vm186_vm0, %v1073_v11  ;;  %v1096_v11 = vld [vmem:[#allocation14 + $0x28] sm:$0xff]  }
  0x90   :  { %960 = vmatpush3.bf16.msra.mxu1 %v1074_v12  ;;  %v1097_v12 = vld [vmem:[#allocation14 + $0x30] sm:$0xff]  }
  0x91   :  { %961 = vmatprep.subr.bf16.mxu1 %v1075_v14 }
  0x94   :  { %962 = vmatpush3.bf16.msra.mxu1 %v1075_v14 }
  0x95   :  { %963 = vmatprep.subr.bf16.mxu1 %v1076_v15 }
  0x98   :  { %964 = vmatpush3.bf16.msra.mxu1 %v1076_v15 }
  0x99   :  { %965 = vmatprep.subr.bf16.mxu1 %v1077_v16 }
  0x9c   :  { %966 = vmatpush3.bf16.msra.mxu1 %v1077_v16 }
  0x9d   :  { %967 = vmatprep.subr.bf16.mxu1 %v1078_v17 }
  0xa0   :  { %968 = vmatpush3.bf16.msra.mxu1 %v1078_v17 }
  0xa1   :  { %969 = vmatprep.subr.bf16.mxu1 %v1079_v18 }
  0xa4   :  { %970 = vmatpush3.bf16.msra.mxu1 %v1079_v18 }
  0xa5   :  { %971 = vmatprep.subr.bf16.mxu1 %v1080_v19 }
  0xa8   :  { %972 = vmatpush3.bf16.msra.mxu1 %v1080_v19 }
  0xa9   :  { %973 = vmatprep.subr.bf16.mxu1 %v1081_v20 }
  0xac   :  { %974 = vmatpush3.bf16.msra.mxu1 %v1081_v20 }
  0xad   :  { %979 = vmatprep.subr.bf16.mxu1 %v1082_v21 }
  0xfe   :  { %v259_v22 = vpop.permute.xlu1 %258 }
 0x100   :  { %v249_v23 = vpop.permute.xlu0 %248 }
 0x102   :  { %v264_v26 = vpop.permute.xlu1 %263 }
 0x104   :  { %v254_v28 = vpop.permute.xlu0 %253 }
 0x106   :  { %v593_v17 = vpop.permute.xlu1 %592 }
 0x108   :  { %v588_v15 = vpop.permute.xlu0 %587 }
 0x162   :  { %v957_v24 = vpop.f32.mrb[0].mxu1 }
 0x163   :  { %v227_v25 = vpop.f32.mrb[1].mxu1  ;;  %v268_v29 = vmul.f32 %v957_v24, %v259_v22  ;;  %v1099_v22 = vld [vmem:[#allocation12] sm:$0xff]   ;;  %v1100_v24 = vld [vmem:[#allocation12 + $0x8] sm:$0xff]  }
 0x164   :  { %v958_v27 = vpop.f32.mrb[2].mxu1  ;;  %v266_v32 = vmul.f32 %v249_v23, %v227_v25  ;;  %v1101_v25 = vld [vmem:[#allocation12 + $0x10] sm:$0xff]  }
 0x165   :  { %v269_v30 = vmul.f32 %v958_v27, %v264_v26  ;;  %v230_v31 = vpop.f32.mrb[3].mxu1  ;;  %v1102_v26 = vld [vmem:[#allocation12 + $0x18] sm:$0xff]   ;;  %v1103_v27 = vld [vmem:[#allocation12 + $0x20] sm:$0xff]  }
 0x166   :  { %v267_v33 = vmul.f32 %v254_v28, %v230_v31  ;;  %v1104_v28 = vld [vmem:[#allocation12 + $0x28] sm:$0xff]  }
 0x167   :  { %v287_v34 = vpack.c.bf16 %v269_v30, %v268_v29  ;;  %v1105_v29 = vld [vmem:[#allocation12 + $0x30] sm:$0xff]   ;;  %v1106_v30 = vld [vmem:[#allocation12 + $0x38] sm:$0xff]  }
 0x168   :  { %v286_v35 = vpack.c.bf16 %v267_v33, %v266_v32 }
 0x16a   :  { %975 = vmatprep.mubr.bf16.mxu1 %v286_v35 }
 0x16b   :  { %976 = vmatmul.mubr.bf16.vlgmr.msra.gmra.mrb[4].mxu1 %v287_v34 }
 0x16c   :  { %980 = vmatpush3.bf16.msra.mxu1 %v1082_v21  ;;  %995 = vmatprep.mubr.bf16.mxu1 %v1497_v1 }
 0x16d   :  { %981 = vmatprep.subr.bf16.mxu1 %v1083_v36 }
 0x170   :  { %982 = vmatpush3.bf16.msra.mxu1 %v1083_v36  ;;  %v890_v36 = vld [vmem:[%s1608_s11] ss:$0 sm:$0xff] }
 0x171   :  { %983 = vmatprep.subr.bf16.mxu1 %v1084_v37 }
 0x174   :  { %984 = vmatpush3.bf16.msra.mxu1 %v1084_v37 }
 0x175   :  { %985 = vmatprep.subr.bf16.mxu1 %v1085_v38 }
 0x178   :  { %986 = vmatpush3.bf16.msra.mxu1 %v1085_v38 }
 0x179   :  { %987 = vmatprep.subr.bf16.mxu1 %v1086_v39 }
 0x17c   :  { %988 = vmatpush3.bf16.msra.mxu1 %v1086_v39 }
 0x17d   :  { %989 = vmatprep.subr.bf16.mxu1 %v1087_v40 }
 0x180   :  { %990 = vmatpush3.bf16.msra.mxu1 %v1087_v40 }
 0x181   :  { %991 = vmatprep.subr.bf16.mxu1 %v1088_v41 }
 0x184   :  { %992 = vmatpush3.bf16.msra.mxu1 %v1088_v41 }
 0x185   :  { %993 = vmatprep.subr.bf16.mxu1 %v1089_v42 }
 0x188   :  { %994 = vmatpush3.bf16.msra.mxu1 %v1089_v42 }
 0x18b   :  { %996 = vmatmul.mubr.bf16.vlgmr.msra.gmra.mrb[4].mxu1 %v1499_v2 }
 0x25e   :  { %v997_v45 = vpop.f32.mrb[4].mxu1 }
 0x25f   :  { %v507_v47 = vadd.f32 %v997_v45, %v871_v44  ;;  %v483_v48 = vpop.f32.mrb[5].mxu1 }
 0x260   :  { %v505_v50 = vadd.f32 %v871_v44, %v483_v48  ;;  %v998_v51 = vpop.f32.mrb[6].mxu1 }
 0x261   :  { %v511_v52 = vmax.f32 %v507_v47, 0.0  ;;  %v508_v54 = vadd.f32 %v998_v51, %v871_v44  ;;  %v486_v56 = vpop.f32.mrb[7].mxu1 }
 0x262   :  { %v509_v57 = vmax.f32 %v505_v50, 0.0  ;;  %v506_v59 = vadd.f32 %v871_v44, %v486_v56 }
 0x263   :  { %v512_v61 = vmax.f32 %v508_v54, 0.0  ;;  %v523_v63 = vmul.f32 %v897_v53, %v511_v52 }
 0x264   :  { %v510_v62 = vmax.f32 %v506_v59, 0.0  ;;  %v521_v1 = vmul.f32 %v893_v58, %v509_v57 }
 0x265   :  { %v524_v0 = vmul.f32 %v898_v55, %v512_v61 }
 0x266   :  { %v522_v2 = vmul.f32 %v894_v60, %v510_v62 }
 0x267   :  { %v526_v3 = vpack.c.bf16 %v524_v0, %v523_v63 }
 0x268   :  { %v1554_v4 = vpack.c.bf16 %v522_v2, %v521_v1 }
 0x26a   :  { %1000 = vmatpush3.bf16.msra.mxu0 %v1554_v4 }
 0x26b   :  { %1001 = vmatprep.subr.bf16.mxu0 %v1303_v43 }
 0x26e   :  { %1002 = vmatpush3.bf16.msra.mxu0 %v526_v3 }
 0x26f   :  { %1007 = vmatprep.subr.bf16.mxu0 %v1303_v43 }
 0x271   :  { %1004 = vmatmul.mubr.msk.bf16.vlgmr.msra.gmra.mrb[0].mxu0 %vm538_vm2, %v1090_v5 }
 0x272   :  { %1008 = vmatpush3.bf16.msra.mxu0 %v1091_v6  ;;  %1023 = vmatprep.mubr.msk.bf16.mxu0 %vm1304_vm1, %v1303_v43 }
 0x273   :  { %1009 = vmatprep.subr.bf16.mxu0 %v1303_v43 }
 0x276   :  { %1010 = vmatpush3.bf16.msra.mxu0 %v1092_v7 }
 0x277   :  { %1011 = vmatprep.subr.bf16.mxu0 %v1303_v43 }
 0x27a   :  { %1012 = vmatpush3.bf16.msra.mxu0 %v1093_v8 }
 0x27b   :  { %1013 = vmatprep.subr.bf16.mxu0 %v1303_v43 }
 0x27e   :  { %1014 = vmatpush3.bf16.msra.mxu0 %v1094_v9 }
 0x27f   :  { %1015 = vmatprep.subr.bf16.mxu0 %v1303_v43 }
 0x282   :  { %1016 = vmatpush3.bf16.msra.mxu0 %v1095_v10 }
 0x283   :  { %1017 = vmatprep.subr.bf16.mxu0 %v1303_v43 }
 0x286   :  { %1018 = vmatpush3.bf16.msra.mxu0 %v1096_v11 }
 0x287   :  { %1019 = vmatprep.subr.bf16.mxu0 %v1303_v43 }
 0x28a   :  { %1020 = vmatpush3.bf16.msra.mxu0 %v1097_v12 }
 0x28b   :  { %1021 = vmatprep.subr.bf16.mxu0 %v1303_v43 }
 0x28e   :  { %1022 = vmatpush3.bf16.msra.mxu0 %v1098_v13 }
 0x28f   :  { %1027 = vmatprep.subr.bf16.mxu0 %v1303_v43 }
 0x344   :  { %v576_v14 = vpop.f32.mrb[0].mxu0 }
 0x345   :  { %v1005_v16 = vpop.f32.mrb[1].mxu0  ;;  %v595_v19 = vmul.f32 %v588_v15, %v576_v14 }
 0x346   :  { %v579_v18 = vpop.f32.mrb[2].mxu0 }
 0x347   :  { %v596_v20 = vmul.f32 %v593_v17, %v579_v18  ;;  %v1006_v21 = vpop.f32.mrb[3].mxu0 }
 0x349   :  { %v597_v23 = vpack.c.bf16 %v596_v20, %v595_v19 }
 0x34b   :  { %1024 = vmatmul.mubr.bf16.vlgmr.msra.gmra.mrb[4].mxu0 %v597_v23 }
 0x34c   :  { %1028 = vmatpush3.bf16.msra.mxu0 %v1099_v22  ;;  %1043 = vmatprep.mubr.msk.bf16.mxu0 %vm1304_vm1, %v1303_v43 }
 0x34d   :  { %1029 = vmatprep.subr.bf16.mxu0 %v1303_v43 }
 0x350   :  { %1030 = vmatpush3.bf16.msra.mxu0 %v1100_v24 }
 0x351   :  { %1031 = vmatprep.subr.bf16.mxu0 %v1303_v43 }
 0x354   :  { %1032 = vmatpush3.bf16.msra.mxu0 %v1101_v25 }
 0x355   :  { %1033 = vmatprep.subr.bf16.mxu0 %v1303_v43 }
 0x358   :  { %1034 = vmatpush3.bf16.msra.mxu0 %v1102_v26 }
 0x359   :  { %1035 = vmatprep.subr.bf16.mxu0 %v1303_v43 }
 0x35c   :  { %1036 = vmatpush3.bf16.msra.mxu0 %v1103_v27 }
 0x35d   :  { %1037 = vmatprep.subr.bf16.mxu0 %v1303_v43 }
 0x360   :  { %1038 = vmatpush3.bf16.msra.mxu0 %v1104_v28 }
 0x361   :  { %1039 = vmatprep.subr.bf16.mxu0 %v1303_v43 }
 0x364   :  { %1040 = vmatpush3.bf16.msra.mxu0 %v1105_v29 }
 0x365   :  { %1041 = vmatprep.subr.bf16.mxu0 %v1303_v43 }
 0x368   :  { %1042 = vmatpush3.bf16.msra.mxu0 %v1106_v30 }
 0x36b   :  { %1044 = vmatmul.mubr.bf16.vlgmr.msra.gmra.mrb[8].mxu0 %v1554_v4 }
 0x41e   :  { %v718_v31 = vpop.f32.mrb[4].mxu0 }
 0x41f   :  { %v1025_v32 = vpop.f32.mrb[5].mxu0 }
 0x420   :  { %v721_v33 = vpop.f32.mrb[6].mxu0 }
 0x421   :  { %v1026_v34 = vpop.f32.mrb[7].mxu0 }
 0x43e   :  { %v807_v35 = vpop.f32.mrb[8].mxu0 }
 0x43f   :  { %v808_v37 = vadd.f32 %v807_v35, %v718_v31  ;;  %v1045_v38 = vpop.f32.mrb[9].mxu0 }
 0x440   :  { %v810_v39 = vpop.f32.mrb[10].mxu0 }
 0x441   :  { %v821_v40 = vadd.f32 %v890_v36, %v808_v37  ;;  %v811_v41 = vadd.f32 %v810_v39, %v721_v33  ;;  %v1046_v42 = vpop.f32.mrb[11].mxu0 }
 0x443   :  { %823 = vst [vmem:[#allocation15] sm:$0xff] %v821_v40  ;;  %v822_v43 = vadd.f32 %v890_v36, %v811_v41 }
 0x445   :  { %824 = vst [vmem:[#allocation15 + $0x8] sm:$0xff] %v822_v43 }
 0x446   :  { %1272 = shalt.err (!%p1269_p4)
}
 0x447   :  { %s1273_s9 = scalar_lea.hbm %s1609_s12, 256 }
 0x448   :  { %p1274_p5 = scmp.ne.s32.totalorder %s1609_s12, %s1273_s9  ;;  %p1277_p6 = scmp.lt.u32.totalorder %s1273_s9, %s1609_s12 }
 0x44a   :  { %p1279_p7 = pnand %p1277_p6, %p1274_p5 }
 0x44c   :  { %1282 = shalt.err (!%p1279_p7)
}
 0x44d   :  { %s1306_s21 = smov 128   ;;  %s1307_s26 = smov 8  }
 0x44e   :  { %836 = dma.vmem_to_hbm [thread:$0]  %s831_s14, 256, %s1609_s12, [#allocation5], %s1306_s21, %s1306_s21, %s1307_s26  }
 0x44f   :  { %1291 = dma.done.wait [#allocation5], 256  }
 0x450   :  { %1292 = vsyncadd [#allocation5], 4294967040 }
 0x451   :  { %840 = vsyncpa [#allocation4], 1 }
 0x452   :  { %841 = vsyncpa [#allocation7], 1 }
 0x453   :  { %842 = vsyncpa [#allocation10], 1 }
 0x454   :  { %843 = vsyncpa [#allocation13], 1 }
 0x455   :  { %844 = vsyncpa [#allocation5], 1 }

</bundles_post_ra>
